<compile_context>
chip_gen: v7x
topology: tpu7x:2x2x1
jax: 0.10.0
libtpu: 0.0.40
codegen_flags: <defaults>
</compile_context>

<pallas_src>
import jax
import jax.numpy as jnp
from jax.experimental import pallas as pl
from jax.experimental.pallas import tpu as pltpu

NUM_CLASSES = 2
CLASS_PAD = 128          # lane-dense logits / output width
NEG_INF = -1e30          # bias for padded (fake) classes -> softmax weight ~0


def _round_up(x, m):
    return ((x + m - 1) // m) * m


def mlp_kernel(x_ref, w1_ref, b1_ref, w2_ref, b2_ref, w3_ref, b3_ref, o_ref):
    x = x_ref[...]                                              # (B, D) bf16

    # Linear 1 + ReLU (bf16 MXU, f32 accumulate, f32 elementwise)
    h1 = jnp.dot(x, w1_ref[...], preferred_element_type=jnp.float32)
    h1 = jnp.maximum(h1 + b1_ref[...], 0.0)                     # (B, D//2) f32

    # Linear 2 + ReLU
    h2 = jnp.dot(h1.astype(jnp.bfloat16), w2_ref[...],
                 preferred_element_type=jnp.float32)
    h2 = jnp.maximum(h2 + b2_ref[...], 0.0)                     # (B, D//4) f32

    # Linear 3 (logits, padded to CLASS_PAD lanes; fake classes get -1e30 bias)
    logits = jnp.dot(h2.astype(jnp.bfloat16), w3_ref[...],
                     preferred_element_type=jnp.float32)
    logits = logits + b3_ref[...]                               # (B, 128) f32

    # Numerically stable softmax; padded lanes contribute exp(-1e30 - m) -> 0
    m = jnp.max(logits, axis=-1, keepdims=True)
    e = jnp.exp(logits - m)
    inv = pl.reciprocal(jnp.sum(e, axis=-1, keepdims=True), approx=True)
    o_ref[...] = e * inv


def init_params(key, image_height, image_width, num_channels):
    """f32 params with PyTorch-equivalent shapes, stored as (in, out)."""
    input_dim = image_height * image_width * num_channels
    h1 = input_dim // 2
    h2 = input_dim // 4
    k1, k2, k3, k4, k5, k6 = jax.random.split(key, 6)

    def uniform_init(k, shape, fan_in):
        bound = 1.0 / jnp.sqrt(fan_in)
        return jax.random.uniform(k, shape, jnp.float32, -bound, bound)

    w1 = uniform_init(k1, (input_dim, h1), input_dim)
    b1 = uniform_init(k2, (1, h1), input_dim)
    w2 = uniform_init(k3, (h1, h2), h1)
    b2 = uniform_init(k4, (1, h2), h1)
    w3 = uniform_init(k5, (h2, NUM_CLASSES), h2)
    b3 = uniform_init(k6, (1, NUM_CLASSES), h2)
    return (w1, b1, w2, b2, w3, b3)


def pack_params(params):
    """Kernel-ready params: bf16 matmul weights, f32 biases, lane-padded head."""
    w1, b1, w2, b2, w3, b3 = params
    h2 = w3.shape[0]
    w3p = jnp.zeros((h2, CLASS_PAD), jnp.float32).at[:, :NUM_CLASSES].set(w3)
    b3p = jnp.full((1, CLASS_PAD), NEG_INF, jnp.float32).at[:, :NUM_CLASSES].set(b3)
    return (w1.astype(jnp.bfloat16), b1.astype(jnp.float32),
            w2.astype(jnp.bfloat16), b2.astype(jnp.float32),
            w3p.astype(jnp.bfloat16), b3p.astype(jnp.float32))


def mlp_classifier_forward(x_nchw, packed_params, *, block_b=512):
    """x_nchw: (N, C, H, W) f32. Returns (N, 2) softmax probabilities (f32)."""
    w1, b1, w2, b2, w3, b3 = packed_params
    n = x_nchw.shape[0]
    d = w1.shape[0]
    h1 = w1.shape[1]
    h2 = w2.shape[1]

    # nn.Flatten (C, H, W order) + bf16 activation stream
    x_flat = x_nchw.reshape(n, -1).astype(jnp.bfloat16)

    # Batch tile: sublane-aligned, no over-padding for tiny batches,
    # large tiles (512 rows) for throughput on big batches.
    blk = min(block_b, _round_up(n, 8))
    n_pad = _round_up(n, blk)
    if n_pad != n:
        x_flat = jnp.pad(x_flat, ((0, n_pad - n), (0, 0)))

    grid = (n_pad // blk,)

    out = pl.pallas_call(
        mlp_kernel,
        out_shape=jax.ShapeDtypeStruct((n_pad, CLASS_PAD), jnp.float32),
        grid=grid,
        in_specs=[
            pl.BlockSpec((blk, d), lambda i: (i, 0)),        # x: streamed tiles
            pl.BlockSpec((d, h1), lambda i: (0, 0)),          # weights stay resident
            pl.BlockSpec((1, h1), lambda i: (0, 0)),
            pl.BlockSpec((h1, h2), lambda i: (0, 0)),
            pl.BlockSpec((1, h2), lambda i: (0, 0)),
            pl.BlockSpec((h2, CLASS_PAD), lambda i: (0, 0)),
            pl.BlockSpec((1, CLASS_PAD), lambda i: (0, 0)),
        ],
        out_specs=pl.BlockSpec((blk, CLASS_PAD), lambda i: (i, 0)),
        compiler_params=pltpu.CompilerParams(
            dimension_semantics=("parallel",),
            vmem_limit_bytes=48 << 20,
        ),
    )(x_flat, w1, b1, w2, b2, w3, b3)

    return out[:n, :NUM_CLASSES]


if __name__ == "__main__":
    # Small shapes: batch=2, channels=4, spatial=16x16 -> input_dim = 1024
    N, C, H, W = 2, 4, 16, 16
    key = jax.random.PRNGKey(0)
    kx, kp = jax.random.split(key)

    x = jax.random.normal(kx, (N, C, H, W), dtype=jnp.float32)
    params = init_params(kp, H, W, C)
    packed = pack_params(params)

    out = mlp_classifier_forward(x, packed)
    out = jax.block_until_ready(out)

    # Reference 1: same bf16-matmul / f32-accumulate path in plain JAX.
    w1p, b1p, w2p, b2p, w3p, b3p = packed
    xf = x.reshape(N, -1).astype(jnp.bfloat16)
    r = jnp.maximum(jnp.dot(xf, w1p, preferred_element_type=jnp.float32) + b1p, 0.0)
    r = jnp.maximum(jnp.dot(r.astype(jnp.bfloat16), w2p,
                            preferred_element_type=jnp.float32) + b2p, 0.0)
    logits = jnp.dot(r.astype(jnp.bfloat16), w3p,
                     preferred_element_type=jnp.float32) + b3p
    ref_bf16 = jax.nn.softmax(logits, axis=-1)[:, :NUM_CLASSES]

    # Reference 2: pure f32 module semantics (looser tolerance due to bf16 weights).
    w1, b1, w2, b2, w3, b3 = params
    xr = x.reshape(N, -1)
    r32 = jnp.maximum(xr @ w1 + b1, 0.0)
    r32 = jnp.maximum(r32 @ w2 + b2, 0.0)
    ref_f32 = jax.nn.softmax(r32 @ w3 + b3, axis=-1)

    assert out.shape == (N, NUM_CLASSES)
    assert jnp.allclose(out, ref_bf16, atol=2e-3, rtol=2e-3)
    assert jnp.allclose(jnp.sum(out, axis=-1), 1.0, atol=2e-3)
    assert jnp.allclose(out, ref_f32, atol=5e-2, rtol=5e-2)

    print("KERNEL_OK")
</pallas_src>

<mosaic_0001>
module attributes {stable_mosaic.version = 11 : i64} {
  func.func @mlp_kernel(%arg0: i32, %arg1: memref<8x1024xbf16, #tpu.memory_space<vmem>>, %arg2: memref<1024x512xbf16, #tpu.memory_space<vmem>>, %arg3: memref<1x512xf32, #tpu.memory_space<vmem>>, %arg4: memref<512x256xbf16, #tpu.memory_space<vmem>>, %arg5: memref<1x256xf32, #tpu.memory_space<vmem>>, %arg6: memref<256x128xbf16, #tpu.memory_space<vmem>>, %arg7: memref<1x128xf32, #tpu.memory_space<vmem>>, %arg8: memref<8x128xf32, #tpu.memory_space<vmem>>) attributes {dimension_semantics = [#tpu.dimension_semantics<parallel>], iteration_bounds = array<i64: 1>, scalar_prefetch = 0 : i64, scratch_operands = 0 : i64, tpu.core_type = #tpu.core_type<tc>, window_params = [{transform_indices = @transform_0, window_bounds = array<i64: 8, 1024>}, {pipeline_mode = #tpu.pipeline_mode<synchronous>, transform_indices = @transform_1, window_bounds = array<i64: 1024, 512>}, {pipeline_mode = #tpu.pipeline_mode<synchronous>, transform_indices = @transform_2, window_bounds = array<i64: 1, 512>}, {pipeline_mode = #tpu.pipeline_mode<synchronous>, transform_indices = @transform_3, window_bounds = array<i64: 512, 256>}, {pipeline_mode = #tpu.pipeline_mode<synchronous>, transform_indices = @transform_4, window_bounds = array<i64: 1, 256>}, {pipeline_mode = #tpu.pipeline_mode<synchronous>, transform_indices = @transform_5, window_bounds = array<i64: 256, 128>}, {pipeline_mode = #tpu.pipeline_mode<synchronous>, transform_indices = @transform_6, window_bounds = array<i64: 1, 128>}, {transform_indices = @transform_7, window_bounds = array<i64: 8, 128>}]} {
    %c0 = arith.constant 0 : index
    %c0_0 = arith.constant 0 : index
    %0 = vector.load %arg1[%c0, %c0_0] : memref<8x1024xbf16, #tpu.memory_space<vmem>>, vector<8x1024xbf16>
    %c0_1 = arith.constant 0 : index
    %c0_2 = arith.constant 0 : index
    %1 = vector.load %arg2[%c0_1, %c0_2] : memref<1024x512xbf16, #tpu.memory_space<vmem>>, vector<1024x512xbf16>
    %cst = arith.constant dense<0.000000e+00> : vector<8x512xf32>
    %2 = tpu.matmul %0, %1, %cst {dimension_numbers = #tpu.dot_dimension_numbers<[1], [0], [0], [1], [0, 0, 1, 1], [], []>} : vector<8x1024xbf16>, vector<1024x512xbf16>, vector<8x512xf32> -> vector<8x512xf32>
    %c0_3 = arith.constant 0 : index
    %c0_4 = arith.constant 0 : index
    %3 = vector.load %arg3[%c0_3, %c0_4] : memref<1x512xf32, #tpu.memory_space<vmem>>, vector<1x512xf32>
    %4 = vector.broadcast %3 : vector<1x512xf32> to vector<8x512xf32>
    %5 = arith.addf %2, %4 : vector<8x512xf32>
    %cst_5 = arith.constant 0.000000e+00 : f32
    %6 = vector.broadcast %cst_5 : f32 to vector<8x512xf32>
    %7 = arith.maximumf %5, %6 : vector<8x512xf32>
    %8 = arith.truncf %7 : vector<8x512xf32> to vector<8x512xbf16>
    %c0_6 = arith.constant 0 : index
    %c0_7 = arith.constant 0 : index
    %9 = vector.load %arg4[%c0_6, %c0_7] : memref<512x256xbf16, #tpu.memory_space<vmem>>, vector<512x256xbf16>
    %cst_8 = arith.constant dense<0.000000e+00> : vector<8x256xf32>
    %10 = tpu.matmul %8, %9, %cst_8 {dimension_numbers = #tpu.dot_dimension_numbers<[1], [0], [0], [1], [0, 0, 1, 1], [], []>} : vector<8x512xbf16>, vector<512x256xbf16>, vector<8x256xf32> -> vector<8x256xf32>
    %c0_9 = arith.constant 0 : index
    %c0_10 = arith.constant 0 : index
    %11 = vector.load %arg5[%c0_9, %c0_10] : memref<1x256xf32, #tpu.memory_space<vmem>>, vector<1x256xf32>
    %12 = vector.broadcast %11 : vector<1x256xf32> to vector<8x256xf32>
    %13 = arith.addf %10, %12 : vector<8x256xf32>
    %cst_11 = arith.constant 0.000000e+00 : f32
    %14 = vector.broadcast %cst_11 : f32 to vector<8x256xf32>
    %15 = arith.maximumf %13, %14 : vector<8x256xf32>
    %16 = arith.truncf %15 : vector<8x256xf32> to vector<8x256xbf16>
    %c0_12 = arith.constant 0 : index
    %c0_13 = arith.constant 0 : index
    %17 = vector.load %arg6[%c0_12, %c0_13] : memref<256x128xbf16, #tpu.memory_space<vmem>>, vector<256x128xbf16>
    %cst_14 = arith.constant dense<0.000000e+00> : vector<8x128xf32>
    %18 = tpu.matmul %16, %17, %cst_14 {dimension_numbers = #tpu.dot_dimension_numbers<[1], [0], [0], [1], [0, 0, 1, 1], [], []>} : vector<8x256xbf16>, vector<256x128xbf16>, vector<8x128xf32> -> vector<8x128xf32>
    %c0_15 = arith.constant 0 : index
    %c0_16 = arith.constant 0 : index
    %19 = vector.load %arg7[%c0_15, %c0_16] : memref<1x128xf32, #tpu.memory_space<vmem>>, vector<1x128xf32>
    %20 = vector.broadcast %19 : vector<1x128xf32> to vector<8x128xf32>
    %21 = arith.addf %18, %20 : vector<8x128xf32>
    %cst_17 = arith.constant dense<0xFF800000> : vector<8xf32>
    %22 = vector.multi_reduction <maximumf>, %21, %cst_17 [1] : vector<8x128xf32> to vector<8xf32>
    %23 = vector.shape_cast %22 : vector<8xf32> to vector<8x1xf32>
    %24 = vector.broadcast %23 : vector<8x1xf32> to vector<8x128xf32>
    %25 = arith.subf %21, %24 : vector<8x128xf32>
    %26 = math.exp %25 : vector<8x128xf32>
    %cst_18 = arith.constant dense<0.000000e+00> : vector<8xf32>
    %27 = vector.multi_reduction <add>, %26, %cst_18 [1] : vector<8x128xf32> to vector<8xf32>
    %28 = vector.shape_cast %27 : vector<8xf32> to vector<8x1xf32>
    %29 = tpu.reciprocal %28 {approx = true} : vector<8x1xf32> -> vector<8x1xf32>
    %30 = vector.broadcast %29 : vector<8x1xf32> to vector<8x128xf32>
    %31 = arith.mulf %26, %30 : vector<8x128xf32>
    %c0_19 = arith.constant 0 : index
    %c0_20 = arith.constant 0 : index
    %32 = vector.load %arg8[%c0_19, %c0_20] : memref<8x128xf32, #tpu.memory_space<vmem>>, vector<8x128xf32>
    tpu.vector_store %arg8[%c0_19, %c0_20], %31 {strides = array<i32>} : memref<8x128xf32, #tpu.memory_space<vmem>>, vector<8x128xf32>,
    return
  }
  func.func @transform_0(%arg0: i32) -> (i32, i32) {
    %c0_i32 = arith.constant 0 : i32
    %c0_i32_0 = arith.constant 0 : i32
    return %arg0, %c0_i32 : i32, i32
  }
  func.func @transform_1(%arg0: i32) -> (i32, i32) {
    %c0_i32 = arith.constant 0 : i32
    %c0_i32_0 = arith.constant 0 : i32
    %c0_i32_1 = arith.constant 0 : i32
    return %c0_i32, %c0_i32_0 : i32, i32
  }
  func.func @transform_2(%arg0: i32) -> (i32, i32) {
    %c0_i32 = arith.constant 0 : i32
    %c0_i32_0 = arith.constant 0 : i32
    %c0_i32_1 = arith.constant 0 : i32
    return %c0_i32, %c0_i32_0 : i32, i32
  }
  func.func @transform_3(%arg0: i32) -> (i32, i32) {
    %c0_i32 = arith.constant 0 : i32
    %c0_i32_0 = arith.constant 0 : i32
    %c0_i32_1 = arith.constant 0 : i32
    return %c0_i32, %c0_i32_0 : i32, i32
  }
  func.func @transform_4(%arg0: i32) -> (i32, i32) {
    %c0_i32 = arith.constant 0 : i32
    %c0_i32_0 = arith.constant 0 : i32
    %c0_i32_1 = arith.constant 0 : i32
    return %c0_i32, %c0_i32_0 : i32, i32
  }
  func.func @transform_5(%arg0: i32) -> (i32, i32) {
    %c0_i32 = arith.constant 0 : i32
    %c0_i32_0 = arith.constant 0 : i32
    %c0_i32_1 = arith.constant 0 : i32
    return %c0_i32, %c0_i32_0 : i32, i32
  }
  func.func @transform_6(%arg0: i32) -> (i32, i32) {
    %c0_i32 = arith.constant 0 : i32
    %c0_i32_0 = arith.constant 0 : i32
    %c0_i32_1 = arith.constant 0 : i32
    return %c0_i32, %c0_i32_0 : i32, i32
  }
  func.func @transform_7(%arg0: i32) -> (i32, i32) {
    %c0_i32 = arith.constant 0 : i32
    %c0_i32_0 = arith.constant 0 : i32
    return %arg0, %c0_i32 : i32, i32
  }
}

</mosaic_0001>

<bundles_post_ra>
// kernel: tpu_custom_call.1
= control target key start
LH: loop header
LB: loop body
LE: loop exit
PB: predicated region body
PF: predicated region fallthrough
CT: control target
= control target key end

     0   :  { %12 = vsyncpa [#allocation3], 0  ;;  %s3911_s0 = inlined_call_operand.hbm [shape: bf16[8,1024], index: 0, kind: input, shape index: {}]   ;;  %s3912_s1 = inlined_call_operand.hbm [shape: bf16[1024,512], index: 1, kind: input, shape index: {}]   ;;  %s3913_s2 = inlined_call_operand.vmem [shape: f32[1,512], index: 2, kind: input, shape index: {}]   ;;  %s3914_s3 = inlined_call_operand.hbm [shape: bf16[512,256], index: 3, kind: input, shape index: {}]   ;;  %s3915_s4 = inlined_call_operand.vmem [shape: f32[1,256], index: 4, kind: input, shape index: {}]   ;;  %s3916_s5 = inlined_call_operand.hbm [shape: bf16[256,128], index: 5, kind: input, shape index: {}]   ;;  %s3917_s6 = inlined_call_operand.vmem [shape: f32[1,128], index: 6, kind: input, shape index: {}]   ;;  %s3918_s7 = inlined_call_operand.hbm [shape: f32[8,128], index: 7, kind: output, shape index: {}]  }
   0x1   :  { %13 = vsyncpa [#allocation6], 0 }
   0x2   :  { %14 = vsyncpa [#allocation9], 0 }
   0x3   :  { %15 = vsyncpa [#allocation4], 0  ;;  %s3727_s24 = smov [#allocation5]   ;;  %s3609_s28 = scalar_lea.hbm %s3912_s1, 32768 }
   0x4   :  { %s31_s25 = sshll.u32 %s3727_s24, 4  ;;  %p3610_p0 = scmp.ne.s32.totalorder %s3912_s1, %s3609_s28  ;;  %s32_s25 = int_to_ptr.vmem [resolvable:$true] %s31_s25 }
   0x5   :  { %p3613_p1 = scmp.lt.u32.totalorder %s3609_s28, %s3912_s1 }
   0x7   :  { %p3615_p2 = pnand %p3613_p1, %p3610_p0 }
   0x9   :  { %3618 = shalt.err (!%p3615_p2)
}
   0xa   :  { %s3619_s10 = scalar_lea.vmem %s32_s25, 32768  ;;  %p3624_p4 = scmp.lt.s32.totalorder %s32_s25, %s32_s25 }
   0xb   :  { %p3620_p3 = scmp.ne.s32.totalorder %s32_s25, %s3619_s10  ;;  %p3625_p5 = scmp.lt.s32.totalorder %s3619_s10, %s3619_s10 }
   0xd   :  { %p3626_p6 = por %p3625_p5, %p3624_p4 }
   0xf   :  { %p3627_p7 = pnand %p3626_p6, %p3620_p3 }
  0x11   :  { %3630 = shalt.err (!%p3627_p7)
}
  0x12   :  { %s3728_s11 = smov 256   ;;  %s3729_s12 = smov 16  }
  0x13   :  { %37 = dma.hbm_to_vmem [thread:$0]  %s3912_s1, 32768, %s32_s25, [#allocation6], %s3728_s11, %s3728_s11, %s3729_s12  }
  0x14   :  { %s3730_s15 = smov [#allocation2]   ;;  %s3731_s17 = smov [#allocation7]  }
  0x15   :  { %s22_s16 = sshll.u32 %s3730_s15, 4  ;;  %s45_s18 = sshll.u32 %s3731_s17, 4  ;;  %s23_s16 = int_to_ptr.vmem [resolvable:$true] %s22_s16  ;;  %s46_s18 = int_to_ptr.vmem [resolvable:$true] %s45_s18 }
  0x16   :  { %s3631_s21 = scalar_lea.hbm %s3911_s0, 512 }
  0x17   :  { %p3632_p8 = scmp.ne.s32.totalorder %s3911_s0, %s3631_s21  ;;  %p3635_p9 = scmp.lt.u32.totalorder %s3631_s21, %s3911_s0 }
  0x19   :  { %p3637_p10 = pnand %p3635_p9, %p3632_p8 }
  0x1b   :  { %3640 = shalt.err (!%p3637_p10)
}
  0x1c   :  { %s3641_s1 = scalar_lea.vmem %s23_s16, 512  ;;  %p3646_p12 = scmp.lt.s32.totalorder %s23_s16, %s23_s16 }
  0x1d   :  { %p3642_p11 = scmp.ne.s32.totalorder %s23_s16, %s3641_s1  ;;  %p3647_p13 = scmp.lt.s32.totalorder %s3641_s1, %s3641_s1 }
  0x1f   :  { %p3648_p0 = por %p3647_p13, %p3646_p12 }
  0x21   :  { %p3649_p1 = pnand %p3648_p0, %p3642_p11 }
  0x23   :  { %3652 = shalt.err (!%p3649_p1)
}
  0x24   :  { %25 = dma.hbm_to_vmem [thread:$0]  %s3911_s0, 512, %s23_s16, [#allocation3]  }
  0x25   :  { %s3653_s30 = scalar_lea.hbm %s3914_s3, 8192 }
  0x26   :  { %p3654_p2 = scmp.ne.s32.totalorder %s3914_s3, %s3653_s30  ;;  %p3657_p3 = scmp.lt.u32.totalorder %s3653_s30, %s3914_s3 }
  0x28   :  { %p3659_p4 = pnand %p3657_p3, %p3654_p2 }
  0x2a   :  { %3662 = shalt.err (!%p3659_p4)
}
  0x2b   :  { %s3663_s12 = scalar_lea.vmem %s46_s18, 8192  ;;  %p3668_p6 = scmp.lt.s32.totalorder %s46_s18, %s46_s18 }
  0x2c   :  { %p3664_p5 = scmp.ne.s32.totalorder %s46_s18, %s3663_s12  ;;  %p3669_p7 = scmp.lt.s32.totalorder %s3663_s12, %s3663_s12 }
  0x2e   :  { %p3670_p8 = por %p3669_p7, %p3668_p6 }
  0x30   :  { %p3671_p9 = pnand %p3670_p8, %p3664_p5 }
  0x32   :  { %3674 = shalt.err (!%p3671_p9)
}
  0x33   :  { %s3732_s0 = smov 128   ;;  %s3733_s13 = smov 8  }
  0x34   :  { %51 = dma.hbm_to_vmem [thread:$0]  %s3914_s3, 8192, %s46_s18, [#allocation6], %s3732_s0, %s3732_s0, %s3733_s13  }
  0x35   :  { %s3734_s16 = smov [#allocation8]   ;;  %s3675_s21 = scalar_lea.hbm %s3916_s5, 2048 }
  0x36   :  { %s59_s17 = sshll.u32 %s3734_s16, 4  ;;  %p3676_p10 = scmp.ne.s32.totalorder %s3916_s5, %s3675_s21  ;;  %s60_s17 = int_to_ptr.vmem [resolvable:$true] %s59_s17 }
  0x37   :  { %p3679_p11 = scmp.lt.u32.totalorder %s3675_s21, %s3916_s5 }
  0x39   :  { %p3681_p12 = pnand %p3679_p11, %p3676_p10 }
  0x3b   :  { %3684 = shalt.err (!%p3681_p12)
}
  0x3c   :  { %s3685_s1 = scalar_lea.vmem %s60_s17, 2048  ;;  %p3690_p0 = scmp.lt.s32.totalorder %s60_s17, %s60_s17 }
  0x3d   :  { %p3686_p13 = scmp.ne.s32.totalorder %s60_s17, %s3685_s1  ;;  %p3691_p1 = scmp.lt.s32.totalorder %s3685_s1, %s3685_s1 }
  0x3f   :  { %p3692_p2 = por %p3691_p1, %p3690_p0 }
  0x41   :  { %p3693_p3 = pnand %p3692_p2, %p3686_p13 }
  0x43   :  { %3696 = shalt.err (!%p3693_p3)
}
  0x44   :  { %s3735_s3 = smov 64   ;;  %s3736_s18 = smov 4  }
  0x45   :  { %65 = dma.hbm_to_vmem [thread:$0]  %s3916_s5, 2048, %s60_s17, [#allocation9], %s3735_s3, %s3735_s3, %s3736_s18  }
  0x46   :  { %3719 = dma.done.wait [#allocation3], 512  }
  0x47   :  { %3720 = vsyncadd [#allocation3], 4294966784 }
  0x48   :  { %3721 = dma.done.wait [#allocation6], 40960  }
  0x49   :  { %3722 = vsyncadd [#allocation6], 4294926336 }
  0x4a   :  { %3723 = dma.done.wait [#allocation9], 2048  }
  0x4b   :  { %3724 = vsyncadd [#allocation9], 4294965248  ;;  %v3101_v0 = vld [vmem:[#allocation5 + $0x4] ss:$16 sps:$4 sm:$0xff]   ;;  %v3105_v2 = vld [vmem:[#allocation5] ss:$16 sps:$4 sm:$0xff]  }
  0x4c   :  { %v3103_v1 = vld [vmem:[#allocation5 + $0x204] ss:$16 sps:$4 sm:$0xff]   ;;  %1671 = vmatprep.subr.bf16.mxu1 %v3101_v0  ;;  %v3106_v3 = vld [vmem:[#allocation5 + $0x200] ss:$16 sps:$4 sm:$0xff]   ;;  %v82_v48 = vld [vmem:[#allocation2 + $0x8] sm:$0xff]  ;;  %s3737_s8 = smov [#allocation10]  }
  0x4d   :  { %1712 = vmatprep.subr.bf16.mxu0 %v3103_v1  ;;  %v3107_v4 = vld [vmem:[#allocation5 + $0x24] ss:$16 sps:$4 sm:$0xff]   ;;  %1672 = vmatpush1.bf16.msra.mxu1 %v3105_v2  ;;  %v3111_v6 = vld [vmem:[#allocation5 + $0x20] ss:$16 sps:$4 sm:$0xff]   ;;  %v3828_v51 = vcombine.high %v82_v48, %v82_v48  ;;  %s2680_s9 = sshll.u32 %s3737_s8, 4  ;;  %s2681_s9 = int_to_ptr.vmem [resolvable:$true] %s2680_s9 }
  0x4e   :  { %1713 = vmatpush1.bf16.msra.mxu0 %v3106_v3  ;;  %v3109_v5 = vld [vmem:[#allocation5 + $0x224] ss:$16 sps:$4 sm:$0xff]   ;;  %1673 = vmatprep.subr.bf16.mxu1 %v3107_v4  ;;  %v3112_v7 = vld [vmem:[#allocation5 + $0x220] ss:$16 sps:$4 sm:$0xff]   ;;  %p3702_p5 = scmp.lt.s32.totalorder %s2681_s9, %s2681_s9 }
  0x4f   :  { %1714 = vmatprep.subr.bf16.mxu0 %v3109_v5  ;;  %v3113_v8 = vld [vmem:[#allocation5 + $0x44] ss:$16 sps:$4 sm:$0xff]   ;;  %v3117_v10 = vld [vmem:[#allocation5 + $0x40] ss:$16 sps:$4 sm:$0xff]   ;;  %1744 = vmatprep.mubr.bf16.mxu0 %v3828_v51  ;;  %v3206_v5 = vld [vmem:[#allocation5 + $0xc] ss:$16 sps:$4 sm:$0xff]  }
  0x50   :  { %v3115_v9 = vld [vmem:[#allocation5 + $0x244] ss:$16 sps:$4 sm:$0xff]   ;;  %v3118_v11 = vld [vmem:[#allocation5 + $0x240] ss:$16 sps:$4 sm:$0xff]  }
  0x51   :  { %1674 = vmatpush1.bf16.msra.mxu1 %v3111_v6  ;;  %v3119_v12 = vld [vmem:[#allocation5 + $0x64] ss:$16 sps:$4 sm:$0xff]   ;;  %v3123_v14 = vld [vmem:[#allocation5 + $0x60] ss:$16 sps:$4 sm:$0xff]  }
  0x52   :  { %1715 = vmatpush1.bf16.msra.mxu0 %v3112_v7  ;;  %1675 = vmatprep.subr.bf16.mxu1 %v3113_v8  ;;  %v3121_v13 = vld [vmem:[#allocation5 + $0x264] ss:$16 sps:$4 sm:$0xff]   ;;  %v3124_v15 = vld [vmem:[#allocation5 + $0x260] ss:$16 sps:$4 sm:$0xff]   ;;  %v3834_v7 = vcombine.low %v82_v48, %v82_v48 }
  0x53   :  { %1716 = vmatprep.subr.bf16.mxu0 %v3115_v9  ;;  %v3125_v16 = vld [vmem:[#allocation5 + $0x84] ss:$16 sps:$4 sm:$0xff]   ;;  %v3129_v18 = vld [vmem:[#allocation5 + $0x80] ss:$16 sps:$4 sm:$0xff]   ;;  %v3204_v9 = vld [vmem:[#allocation5 + $0x8] ss:$16 sps:$4 sm:$0xff]  }
  0x54   :  { %v3127_v17 = vld [vmem:[#allocation5 + $0x284] ss:$16 sps:$4 sm:$0xff]   ;;  %v3130_v19 = vld [vmem:[#allocation5 + $0x280] ss:$16 sps:$4 sm:$0xff]  }
  0x55   :  { %1676 = vmatpush1.bf16.msra.mxu1 %v3117_v10  ;;  %v3131_v20 = vld [vmem:[#allocation5 + $0xa4] ss:$16 sps:$4 sm:$0xff]   ;;  %v3135_v22 = vld [vmem:[#allocation5 + $0xa0] ss:$16 sps:$4 sm:$0xff]  }
  0x56   :  { %1717 = vmatpush1.bf16.msra.mxu0 %v3118_v11  ;;  %1677 = vmatprep.subr.bf16.mxu1 %v3119_v12  ;;  %v3133_v21 = vld [vmem:[#allocation5 + $0x2a4] ss:$16 sps:$4 sm:$0xff]   ;;  %v3136_v23 = vld [vmem:[#allocation5 + $0x2a0] ss:$16 sps:$4 sm:$0xff]   ;;  %v3212_v11 = vld [vmem:[#allocation5 + $0x2c] ss:$16 sps:$4 sm:$0xff]  }
  0x57   :  { %1718 = vmatprep.subr.bf16.mxu0 %v3121_v13  ;;  %v3137_v24 = vld [vmem:[#allocation5 + $0xc4] ss:$16 sps:$4 sm:$0xff]   ;;  %v3141_v26 = vld [vmem:[#allocation5 + $0xc0] ss:$16 sps:$4 sm:$0xff]   ;;  %v3210_v13 = vld [vmem:[#allocation5 + $0x28] ss:$16 sps:$4 sm:$0xff]  }
  0x58   :  { %v3139_v25 = vld [vmem:[#allocation5 + $0x2c4] ss:$16 sps:$4 sm:$0xff]   ;;  %v3142_v27 = vld [vmem:[#allocation5 + $0x2c0] ss:$16 sps:$4 sm:$0xff]  }
  0x59   :  { %1678 = vmatpush1.bf16.msra.mxu1 %v3123_v14  ;;  %v3143_v28 = vld [vmem:[#allocation5 + $0xe4] ss:$16 sps:$4 sm:$0xff]   ;;  %v3147_v30 = vld [vmem:[#allocation5 + $0xe0] ss:$16 sps:$4 sm:$0xff]  }
  0x5a   :  { %1719 = vmatpush1.bf16.msra.mxu0 %v3124_v15  ;;  %1679 = vmatprep.subr.bf16.mxu1 %v3125_v16  ;;  %v3145_v29 = vld [vmem:[#allocation5 + $0x2e4] ss:$16 sps:$4 sm:$0xff]   ;;  %v3148_v31 = vld [vmem:[#allocation5 + $0x2e0] ss:$16 sps:$4 sm:$0xff]   ;;  %v3218_v15 = vld [vmem:[#allocation5 + $0x4c] ss:$16 sps:$4 sm:$0xff]  }
  0x5b   :  { %1720 = vmatprep.subr.bf16.mxu0 %v3127_v17  ;;  %v3149_v32 = vld [vmem:[#allocation5 + $0x104] ss:$16 sps:$4 sm:$0xff]   ;;  %v3153_v34 = vld [vmem:[#allocation5 + $0x100] ss:$16 sps:$4 sm:$0xff]   ;;  %v3216_v17 = vld [vmem:[#allocation5 + $0x48] ss:$16 sps:$4 sm:$0xff]  }
  0x5c   :  { %v3151_v33 = vld [vmem:[#allocation5 + $0x304] ss:$16 sps:$4 sm:$0xff]   ;;  %v3154_v35 = vld [vmem:[#allocation5 + $0x300] ss:$16 sps:$4 sm:$0xff]  }
  0x5d   :  { %1680 = vmatpush1.bf16.msra.mxu1 %v3129_v18  ;;  %v3155_v36 = vld [vmem:[#allocation5 + $0x124] ss:$16 sps:$4 sm:$0xff]   ;;  %v3159_v38 = vld [vmem:[#allocation5 + $0x120] ss:$16 sps:$4 sm:$0xff]  }
  0x5e   :  { %1721 = vmatpush1.bf16.msra.mxu0 %v3130_v19  ;;  %1681 = vmatprep.subr.bf16.mxu1 %v3131_v20  ;;  %v3157_v37 = vld [vmem:[#allocation5 + $0x324] ss:$16 sps:$4 sm:$0xff]   ;;  %v3160_v39 = vld [vmem:[#allocation5 + $0x320] ss:$16 sps:$4 sm:$0xff]   ;;  %v3224_v19 = vld [vmem:[#allocation5 + $0x6c] ss:$16 sps:$4 sm:$0xff]  }
  0x5f   :  { %1722 = vmatprep.subr.bf16.mxu0 %v3133_v21  ;;  %v3161_v40 = vld [vmem:[#allocation5 + $0x144] ss:$16 sps:$4 sm:$0xff]   ;;  %v3165_v42 = vld [vmem:[#allocation5 + $0x140] ss:$16 sps:$4 sm:$0xff]   ;;  %v3222_v21 = vld [vmem:[#allocation5 + $0x68] ss:$16 sps:$4 sm:$0xff]  }
  0x60   :  { %v3163_v41 = vld [vmem:[#allocation5 + $0x344] ss:$16 sps:$4 sm:$0xff]   ;;  %v3166_v43 = vld [vmem:[#allocation5 + $0x340] ss:$16 sps:$4 sm:$0xff]  }
  0x61   :  { %1682 = vmatpush1.bf16.msra.mxu1 %v3135_v22  ;;  %v3167_v44 = vld [vmem:[#allocation5 + $0x164] ss:$16 sps:$4 sm:$0xff]   ;;  %v3171_v49 = vld [vmem:[#allocation5 + $0x160] ss:$16 sps:$4 sm:$0xff]  }
  0x62   :  { %1723 = vmatpush1.bf16.msra.mxu0 %v3136_v23  ;;  %1683 = vmatprep.subr.bf16.mxu1 %v3137_v24  ;;  %v3169_v45 = vld [vmem:[#allocation5 + $0x364] ss:$16 sps:$4 sm:$0xff]   ;;  %v3172_v50 = vld [vmem:[#allocation5 + $0x360] ss:$16 sps:$4 sm:$0xff]   ;;  %v3230_v23 = vld [vmem:[#allocation5 + $0x8c] ss:$16 sps:$4 sm:$0xff]  }
  0x63   :  { %1724 = vmatprep.subr.bf16.mxu0 %v3139_v25  ;;  %v81_v46 = vld [vmem:[#allocation2] sm:$0xff]  ;;  %v3228_v25 = vld [vmem:[#allocation5 + $0x88] ss:$16 sps:$4 sm:$0xff]  }
  0x64   :  { %v3826_v47 = vcombine.high %v81_v46, %v81_v46  ;;  %v3173_v52 = vld [vmem:[#allocation5 + $0x184] ss:$16 sps:$4 sm:$0xff]   ;;  %v3177_v54 = vld [vmem:[#allocation5 + $0x180] ss:$16 sps:$4 sm:$0xff]   ;;  %v3832_v6 = vcombine.low %v81_v46, %v81_v46 }
  0x65   :  { %1684 = vmatpush1.bf16.msra.mxu1 %v3141_v26  ;;  %v3175_v53 = vld [vmem:[#allocation5 + $0x384] ss:$16 sps:$4 sm:$0xff]   ;;  %v3178_v55 = vld [vmem:[#allocation5 + $0x380] ss:$16 sps:$4 sm:$0xff]  }
  0x66   :  { %1725 = vmatpush1.bf16.msra.mxu0 %v3142_v27  ;;  %1685 = vmatprep.subr.bf16.mxu1 %v3143_v28  ;;  %v3179_v56 = vld [vmem:[#allocation5 + $0x1a4] ss:$16 sps:$4 sm:$0xff]   ;;  %v3183_v58 = vld [vmem:[#allocation5 + $0x1a0] ss:$16 sps:$4 sm:$0xff]   ;;  %v3236_v27 = vld [vmem:[#allocation5 + $0xac] ss:$16 sps:$4 sm:$0xff]  }
  0x67   :  { %1726 = vmatprep.subr.bf16.mxu0 %v3145_v29  ;;  %1703 = vmatprep.mubr.bf16.mxu1 %v3826_v47  ;;  %v3181_v57 = vld [vmem:[#allocation5 + $0x3a4] ss:$16 sps:$4 sm:$0xff]   ;;  %v3184_v59 = vld [vmem:[#allocation5 + $0x3a0] ss:$16 sps:$4 sm:$0xff]   ;;  %v3234_v29 = vld [vmem:[#allocation5 + $0xa8] ss:$16 sps:$4 sm:$0xff]  }
  0x68   :  { %v3185_v60 = vld [vmem:[#allocation5 + $0x1c4] ss:$16 sps:$4 sm:$0xff]   ;;  %v3189_v62 = vld [vmem:[#allocation5 + $0x1c0] ss:$16 sps:$4 sm:$0xff]  }
  0x69   :  { %1686 = vmatpush1.bf16.msra.mxu1 %v3147_v30  ;;  %v3187_v61 = vld [vmem:[#allocation5 + $0x3c4] ss:$16 sps:$4 sm:$0xff]   ;;  %v3190_v63 = vld [vmem:[#allocation5 + $0x3c0] ss:$16 sps:$4 sm:$0xff]  }
  0x6a   :  { %1727 = vmatpush1.bf16.msra.mxu0 %v3148_v31  ;;  %1687 = vmatprep.subr.bf16.mxu1 %v3149_v32  ;;  %v3191_v0 = vld [vmem:[#allocation5 + $0x1e4] ss:$16 sps:$4 sm:$0xff]   ;;  %v3195_v2 = vld [vmem:[#allocation5 + $0x1e0] ss:$16 sps:$4 sm:$0xff]   ;;  %v3242_v31 = vld [vmem:[#allocation5 + $0xcc] ss:$16 sps:$4 sm:$0xff]  }
  0x6b   :  { %1728 = vmatprep.subr.bf16.mxu0 %v3151_v33  ;;  %v3193_v1 = vld [vmem:[#allocation5 + $0x3e4] ss:$16 sps:$4 sm:$0xff]   ;;  %v3196_v3 = vld [vmem:[#allocation5 + $0x3e0] ss:$16 sps:$4 sm:$0xff]  }
  0x6c   :  { %v3203_v4 = vld [vmem:[#allocation5 + $0x404] ss:$16 sps:$4 sm:$0xff]   ;;  %v3201_v8 = vld [vmem:[#allocation5 + $0x400] ss:$16 sps:$4 sm:$0xff]  }
  0x6d   :  { %1688 = vmatpush1.bf16.msra.mxu1 %v3153_v34  ;;  %v3209_v10 = vld [vmem:[#allocation5 + $0x424] ss:$16 sps:$4 sm:$0xff]   ;;  %v3207_v12 = vld [vmem:[#allocation5 + $0x420] ss:$16 sps:$4 sm:$0xff]  }
  0x6e   :  { %1729 = vmatpush1.bf16.msra.mxu0 %v3154_v35  ;;  %1689 = vmatprep.subr.bf16.mxu1 %v3155_v36  ;;  %v3215_v14 = vld [vmem:[#allocation5 + $0x444] ss:$16 sps:$4 sm:$0xff]   ;;  %v3213_v16 = vld [vmem:[#allocation5 + $0x440] ss:$16 sps:$4 sm:$0xff]   ;;  %v3240_v35 = vld [vmem:[#allocation5 + $0xc8] ss:$16 sps:$4 sm:$0xff]  }
  0x6f   :  { %1730 = vmatprep.subr.bf16.mxu0 %v3157_v37  ;;  %v3221_v18 = vld [vmem:[#allocation5 + $0x464] ss:$16 sps:$4 sm:$0xff]   ;;  %v3219_v20 = vld [vmem:[#allocation5 + $0x460] ss:$16 sps:$4 sm:$0xff]   ;;  %v3248_v37 = vld [vmem:[#allocation5 + $0xec] ss:$16 sps:$4 sm:$0xff]  }
  0x70   :  { %v3227_v22 = vld [vmem:[#allocation5 + $0x484] ss:$16 sps:$4 sm:$0xff]   ;;  %v3225_v24 = vld [vmem:[#allocation5 + $0x480] ss:$16 sps:$4 sm:$0xff]  }
  0x71   :  { %1690 = vmatpush1.bf16.msra.mxu1 %v3159_v38  ;;  %v3233_v26 = vld [vmem:[#allocation5 + $0x4a4] ss:$16 sps:$4 sm:$0xff]   ;;  %v3231_v28 = vld [vmem:[#allocation5 + $0x4a0] ss:$16 sps:$4 sm:$0xff]  }
  0x72   :  { %1731 = vmatpush1.bf16.msra.mxu0 %v3160_v39  ;;  %1691 = vmatprep.subr.bf16.mxu1 %v3161_v40  ;;  %v3239_v30 = vld [vmem:[#allocation5 + $0x4c4] ss:$16 sps:$4 sm:$0xff]   ;;  %v3237_v33 = vld [vmem:[#allocation5 + $0x4c0] ss:$16 sps:$4 sm:$0xff]   ;;  %v3246_v39 = vld [vmem:[#allocation5 + $0xe8] ss:$16 sps:$4 sm:$0xff]  }
  0x73   :  { %1732 = vmatprep.subr.bf16.mxu0 %v3163_v41  ;;  %v3839_v32 = vld [vmem:[#allocation2 + $0x10] sm:$0xff]  ;;  %v3254_v41 = vld [vmem:[#allocation5 + $0x10c] ss:$16 sps:$4 sm:$0xff]  }
  0x74   :  { %v3843_v34 = vcombine.high %v3839_v32, %v3839_v32  ;;  %v3245_v36 = vld [vmem:[#allocation5 + $0x4e4] ss:$16 sps:$4 sm:$0xff]   ;;  %v3243_v38 = vld [vmem:[#allocation5 + $0x4e0] ss:$16 sps:$4 sm:$0xff]  }
  0x75   :  { %1692 = vmatpush1.bf16.msra.mxu1 %v3165_v42  ;;  %v3251_v40 = vld [vmem:[#allocation5 + $0x504] ss:$16 sps:$4 sm:$0xff]   ;;  %v3249_v42 = vld [vmem:[#allocation5 + $0x500] ss:$16 sps:$4 sm:$0xff]  }
  0x76   :  { %1733 = vmatpush1.bf16.msra.mxu0 %v3166_v43  ;;  %1693 = vmatprep.subr.bf16.mxu1 %v3167_v44  ;;  %v3252_v43 = vld [vmem:[#allocation5 + $0x108] ss:$16 sps:$4 sm:$0xff]   ;;  %v3257_v44 = vld [vmem:[#allocation5 + $0x524] ss:$16 sps:$4 sm:$0xff]   ;;  %v3255_v46 = vld [vmem:[#allocation5 + $0x520] ss:$16 sps:$4 sm:$0xff]  }
  0x77   :  { %1734 = vmatprep.subr.bf16.mxu0 %v3169_v45  ;;  %v3260_v45 = vld [vmem:[#allocation5 + $0x12c] ss:$16 sps:$4 sm:$0xff]   ;;  %v3263_v48 = vld [vmem:[#allocation5 + $0x544] ss:$16 sps:$4 sm:$0xff]  }
  0x79   :  { %1694 = vmatpush1.bf16.msra.mxu1 %v3171_v49  ;;  %v3266_v49 = vld [vmem:[#allocation5 + $0x14c] ss:$16 sps:$4 sm:$0xff]  }
  0x7a   :  { %1735 = vmatpush1.bf16.msra.mxu0 %v3172_v50  ;;  %1695 = vmatprep.subr.bf16.mxu1 %v3173_v52  ;;  %v3261_v50 = vld [vmem:[#allocation5 + $0x540] ss:$16 sps:$4 sm:$0xff]   ;;  %v3264_v52 = vld [vmem:[#allocation5 + $0x148] ss:$16 sps:$4 sm:$0xff]  }
  0x7b   :  { %1736 = vmatprep.subr.bf16.mxu0 %v3175_v53  ;;  %v3269_v53 = vld [vmem:[#allocation5 + $0x564] ss:$16 sps:$4 sm:$0xff]  }
  0x7d   :  { %1696 = vmatpush1.bf16.msra.mxu1 %v3177_v54  ;;  %v3272_v54 = vld [vmem:[#allocation5 + $0x16c] ss:$16 sps:$4 sm:$0xff]  }
  0x7e   :  { %1737 = vmatpush1.bf16.msra.mxu0 %v3178_v55  ;;  %1697 = vmatprep.subr.bf16.mxu1 %v3179_v56  ;;  %v3267_v55 = vld [vmem:[#allocation5 + $0x560] ss:$16 sps:$4 sm:$0xff]   ;;  %v3270_v56 = vld [vmem:[#allocation5 + $0x168] ss:$16 sps:$4 sm:$0xff]  }
  0x7f   :  { %1738 = vmatprep.subr.bf16.mxu0 %v3181_v57  ;;  %v3275_v57 = vld [vmem:[#allocation5 + $0x584] ss:$16 sps:$4 sm:$0xff]  }
  0x81   :  { %1698 = vmatpush1.bf16.msra.mxu1 %v3183_v58  ;;  %v3278_v58 = vld [vmem:[#allocation5 + $0x18c] ss:$16 sps:$4 sm:$0xff]  }
  0x82   :  { %1739 = vmatpush1.bf16.msra.mxu0 %v3184_v59  ;;  %1699 = vmatprep.subr.bf16.mxu1 %v3185_v60  ;;  %v3273_v59 = vld [vmem:[#allocation5 + $0x580] ss:$16 sps:$4 sm:$0xff]   ;;  %v3276_v60 = vld [vmem:[#allocation5 + $0x188] ss:$16 sps:$4 sm:$0xff]  }
  0x83   :  { %1740 = vmatprep.subr.bf16.mxu0 %v3187_v61  ;;  %v3281_v61 = vld [vmem:[#allocation5 + $0x5a4] ss:$16 sps:$4 sm:$0xff]  }
  0x85   :  { %1700 = vmatpush1.bf16.msra.mxu1 %v3189_v62  ;;  %v3284_v62 = vld [vmem:[#allocation5 + $0x1ac] ss:$16 sps:$4 sm:$0xff]  }
  0x86   :  { %1741 = vmatpush1.bf16.msra.mxu0 %v3190_v63  ;;  %1701 = vmatprep.subr.bf16.mxu1 %v3191_v0  ;;  %v3279_v63 = vld [vmem:[#allocation5 + $0x5a0] ss:$16 sps:$4 sm:$0xff]   ;;  %v3282_v0 = vld [vmem:[#allocation5 + $0x1a8] ss:$16 sps:$4 sm:$0xff]  }
  0x87   :  { %1742 = vmatprep.subr.bf16.mxu0 %v3193_v1  ;;  %v3287_v1 = vld [vmem:[#allocation5 + $0x5c4] ss:$16 sps:$4 sm:$0xff]  }
  0x89   :  { %1702 = vmatpush1.bf16.msra.mxu1 %v3195_v2  ;;  %v3290_v2 = vld [vmem:[#allocation5 + $0x1cc] ss:$16 sps:$4 sm:$0xff]  }
  0x8a   :  { %1743 = vmatpush1.bf16.msra.mxu0 %v3196_v3  ;;  %1835 = vmatprep.subr.bf16.mxu1 %v3206_v5  ;;  %v3285_v3 = vld [vmem:[#allocation5 + $0x5c0] ss:$16 sps:$4 sm:$0xff]   ;;  %v3293_v5 = vld [vmem:[#allocation5 + $0x5e4] ss:$16 sps:$4 sm:$0xff]  }
  0x8b   :  { %1753 = vmatprep.subr.bf16.mxu0 %v3203_v4  ;;  %v3288_v4 = vld [vmem:[#allocation5 + $0x1c8] ss:$16 sps:$4 sm:$0xff]  }
  0x8c   :  { %1704 = vmatmul.mubr.bf16.vlgmr.msra.gmra.mrb[0].mxu1 %v3832_v6 }
  0x8d   :  { %1745 = vmatmul.mubr.bf16.vlgmr.msra.gmra.mrb[0].mxu0 %v3834_v7  ;;  %1836 = vmatpush1.bf16.msra.mxu1 %v3204_v9  ;;  %v3291_v9 = vld [vmem:[#allocation5 + $0x5e0] ss:$16 sps:$4 sm:$0xff]  }
  0x8e   :  { %1754 = vmatpush1.bf16.msra.mxu0 %v3201_v8  ;;  %1837 = vmatprep.subr.bf16.mxu1 %v3212_v11  ;;  %v3296_v8 = vld [vmem:[#allocation5 + $0x1ec] ss:$16 sps:$4 sm:$0xff]   ;;  %v3301_v11 = vld [vmem:[#allocation5 + $0x604] ss:$16 sps:$4 sm:$0xff]  }
  0x8f   :  { %1755 = vmatprep.subr.bf16.mxu0 %v3209_v10  ;;  %1867 = vmatprep.mubr.bf16.mxu1 %v3826_v47  ;;  %v3258_v47 = vld [vmem:[#allocation5 + $0x128] ss:$16 sps:$4 sm:$0xff]  }
  0x90   :  { %1785 = vmatprep.mubr.bf16.mxu0 %v3843_v34  ;;  %v3294_v10 = vld [vmem:[#allocation5 + $0x1e8] ss:$16 sps:$4 sm:$0xff]  }
  0x91   :  { %1838 = vmatpush1.bf16.msra.mxu1 %v3210_v13  ;;  %v3848_v13 = vcombine.low %v3839_v32, %v3839_v32  ;;  %v3326_v32 = vld [vmem:[#allocation5 + $0x288] ss:$16 sps:$4 sm:$0xff]  }
  0x92   :  { %1756 = vmatpush1.bf16.msra.mxu0 %v3207_v12  ;;  %1839 = vmatprep.subr.bf16.mxu1 %v3218_v15  ;;  %v3304_v12 = vld [vmem:[#allocation5 + $0x20c] ss:$16 sps:$4 sm:$0xff]   ;;  %v3302_v15 = vld [vmem:[#allocation5 + $0x208] ss:$16 sps:$4 sm:$0xff]  }
  0x93   :  { %1757 = vmatprep.subr.bf16.mxu0 %v3215_v14  ;;  %v3299_v14 = vld [vmem:[#allocation5 + $0x600] ss:$16 sps:$4 sm:$0xff]  }
  0x95   :  { %1840 = vmatpush1.bf16.msra.mxu1 %v3216_v17  ;;  %v3310_v17 = vld [vmem:[#allocation5 + $0x22c] ss:$16 sps:$4 sm:$0xff]  }
  0x96   :  { %1758 = vmatpush1.bf16.msra.mxu0 %v3213_v16  ;;  %1841 = vmatprep.subr.bf16.mxu1 %v3224_v19  ;;  %v3307_v16 = vld [vmem:[#allocation5 + $0x624] ss:$16 sps:$4 sm:$0xff]  }
  0x97   :  { %1759 = vmatprep.subr.bf16.mxu0 %v3221_v18  ;;  %v3850_v18 = vld [vmem:[#allocation2 + $0x18] sm:$0xff] }
  0x98   :  { %v3854_v19 = vcombine.high %v3850_v18, %v3850_v18 }
  0x99   :  { %1842 = vmatpush1.bf16.msra.mxu1 %v3222_v21  ;;  %v3308_v21 = vld [vmem:[#allocation5 + $0x228] ss:$16 sps:$4 sm:$0xff]  }
  0x9a   :  { %1760 = vmatpush1.bf16.msra.mxu0 %v3219_v20  ;;  %1843 = vmatprep.subr.bf16.mxu1 %v3230_v23  ;;  %v3305_v20 = vld [vmem:[#allocation5 + $0x620] ss:$16 sps:$4 sm:$0xff]   ;;  %v3316_v23 = vld [vmem:[#allocation5 + $0x24c] ss:$16 sps:$4 sm:$0xff]  }
  0x9b   :  { %1761 = vmatprep.subr.bf16.mxu0 %v3227_v22  ;;  %v3313_v22 = vld [vmem:[#allocation5 + $0x644] ss:$16 sps:$4 sm:$0xff]  }
  0x9d   :  { %1844 = vmatpush1.bf16.msra.mxu1 %v3228_v25  ;;  %v3314_v25 = vld [vmem:[#allocation5 + $0x248] ss:$16 sps:$4 sm:$0xff]  }
  0x9e   :  { %1762 = vmatpush1.bf16.msra.mxu0 %v3225_v24  ;;  %1845 = vmatprep.subr.bf16.mxu1 %v3236_v27  ;;  %v3311_v24 = vld [vmem:[#allocation5 + $0x640] ss:$16 sps:$4 sm:$0xff]  }
  0x9f   :  { %1763 = vmatprep.subr.bf16.mxu0 %v3233_v26  ;;  %v3319_v26 = vld [vmem:[#allocation5 + $0x664] ss:$16 sps:$4 sm:$0xff]   ;;  %v3317_v27 = vld [vmem:[#allocation5 + $0x660] ss:$16 sps:$4 sm:$0xff]  }
  0xa1   :  { %1846 = vmatpush1.bf16.msra.mxu1 %v3234_v29  ;;  %v3325_v29 = vld [vmem:[#allocation5 + $0x684] ss:$16 sps:$4 sm:$0xff]  }
  0xa2   :  { %1764 = vmatpush1.bf16.msra.mxu0 %v3231_v28  ;;  %1847 = vmatprep.subr.bf16.mxu1 %v3242_v31  ;;  %v3320_v28 = vld [vmem:[#allocation5 + $0x268] ss:$16 sps:$4 sm:$0xff]   ;;  %v3323_v31 = vld [vmem:[#allocation5 + $0x680] ss:$16 sps:$4 sm:$0xff]  }
  0xa3   :  { %1765 = vmatprep.subr.bf16.mxu0 %v3239_v30  ;;  %v3328_v30 = vld [vmem:[#allocation5 + $0x28c] ss:$16 sps:$4 sm:$0xff]  }
  0xa5   :  { %1848 = vmatpush1.bf16.msra.mxu1 %v3240_v35  ;;  %v3329_v35 = vld [vmem:[#allocation5 + $0x6a0] ss:$16 sps:$4 sm:$0xff]  }
  0xa6   :  { %1766 = vmatpush1.bf16.msra.mxu0 %v3237_v33  ;;  %1849 = vmatprep.subr.bf16.mxu1 %v3248_v37  ;;  %v3334_v33 = vld [vmem:[#allocation5 + $0x2ac] ss:$16 sps:$4 sm:$0xff]   ;;  %v3337_v37 = vld [vmem:[#allocation5 + $0x6c4] ss:$16 sps:$4 sm:$0xff]  }
  0xa7   :  { %1767 = vmatprep.subr.bf16.mxu0 %v3245_v36  ;;  %v3332_v36 = vld [vmem:[#allocation5 + $0x2a8] ss:$16 sps:$4 sm:$0xff]  }
  0xa9   :  { %1850 = vmatpush1.bf16.msra.mxu1 %v3246_v39  ;;  %v3335_v39 = vld [vmem:[#allocation5 + $0x6c0] ss:$16 sps:$4 sm:$0xff]  }
  0xaa   :  { %1768 = vmatpush1.bf16.msra.mxu0 %v3243_v38  ;;  %1851 = vmatprep.subr.bf16.mxu1 %v3254_v41  ;;  %v3340_v38 = vld [vmem:[#allocation5 + $0x2cc] ss:$16 sps:$4 sm:$0xff]   ;;  %v3343_v41 = vld [vmem:[#allocation5 + $0x6e4] ss:$16 sps:$4 sm:$0xff]  }
  0xab   :  { %1769 = vmatprep.subr.bf16.mxu0 %v3251_v40  ;;  %v3338_v40 = vld [vmem:[#allocation5 + $0x2c8] ss:$16 sps:$4 sm:$0xff]  }
  0xad   :  { %1852 = vmatpush1.bf16.msra.mxu1 %v3252_v43  ;;  %v3341_v43 = vld [vmem:[#allocation5 + $0x6e0] ss:$16 sps:$4 sm:$0xff]  }
  0xae   :  { %1770 = vmatpush1.bf16.msra.mxu0 %v3249_v42  ;;  %1853 = vmatprep.subr.bf16.mxu1 %v3260_v45  ;;  %v3346_v42 = vld [vmem:[#allocation5 + $0x2ec] ss:$16 sps:$4 sm:$0xff]   ;;  %v3349_v45 = vld [vmem:[#allocation5 + $0x704] ss:$16 sps:$4 sm:$0xff]  }
  0xaf   :  { %1771 = vmatprep.subr.bf16.mxu0 %v3257_v44  ;;  %v3344_v44 = vld [vmem:[#allocation5 + $0x2e8] ss:$16 sps:$4 sm:$0xff]  }
  0xb1   :  { %1854 = vmatpush1.bf16.msra.mxu1 %v3258_v47  ;;  %v3347_v47 = vld [vmem:[#allocation5 + $0x700] ss:$16 sps:$4 sm:$0xff]  }
  0xb2   :  { %1772 = vmatpush1.bf16.msra.mxu0 %v3255_v46  ;;  %1855 = vmatprep.subr.bf16.mxu1 %v3266_v49  ;;  %v3352_v46 = vld [vmem:[#allocation5 + $0x30c] ss:$16 sps:$4 sm:$0xff]   ;;  %v3355_v49 = vld [vmem:[#allocation5 + $0x724] ss:$16 sps:$4 sm:$0xff]  }
  0xb3   :  { %1773 = vmatprep.subr.bf16.mxu0 %v3263_v48  ;;  %v3350_v48 = vld [vmem:[#allocation5 + $0x308] ss:$16 sps:$4 sm:$0xff]  }
  0xb5   :  { %1856 = vmatpush1.bf16.msra.mxu1 %v3264_v52  ;;  %v3353_v52 = vld [vmem:[#allocation5 + $0x720] ss:$16 sps:$4 sm:$0xff]  }
  0xb6   :  { %1774 = vmatpush1.bf16.msra.mxu0 %v3261_v50  ;;  %1857 = vmatprep.subr.bf16.mxu1 %v3272_v54  ;;  %v3358_v50 = vld [vmem:[#allocation5 + $0x32c] ss:$16 sps:$4 sm:$0xff]   ;;  %v3361_v54 = vld [vmem:[#allocation5 + $0x744] ss:$16 sps:$4 sm:$0xff]  }
  0xb7   :  { %1775 = vmatprep.subr.bf16.mxu0 %v3269_v53  ;;  %v3356_v53 = vld [vmem:[#allocation5 + $0x328] ss:$16 sps:$4 sm:$0xff]  }
  0xb9   :  { %1858 = vmatpush1.bf16.msra.mxu1 %v3270_v56  ;;  %v3359_v56 = vld [vmem:[#allocation5 + $0x740] ss:$16 sps:$4 sm:$0xff]  }
  0xba   :  { %1776 = vmatpush1.bf16.msra.mxu0 %v3267_v55  ;;  %1859 = vmatprep.subr.bf16.mxu1 %v3278_v58  ;;  %v3364_v55 = vld [vmem:[#allocation5 + $0x34c] ss:$16 sps:$4 sm:$0xff]   ;;  %v3367_v58 = vld [vmem:[#allocation5 + $0x764] ss:$16 sps:$4 sm:$0xff]  }
  0xbb   :  { %1777 = vmatprep.subr.bf16.mxu0 %v3275_v57  ;;  %v3362_v57 = vld [vmem:[#allocation5 + $0x348] ss:$16 sps:$4 sm:$0xff]  }
  0xbd   :  { %1860 = vmatpush1.bf16.msra.mxu1 %v3276_v60  ;;  %v3365_v60 = vld [vmem:[#allocation5 + $0x760] ss:$16 sps:$4 sm:$0xff]  }
  0xbe   :  { %1778 = vmatpush1.bf16.msra.mxu0 %v3273_v59  ;;  %1861 = vmatprep.subr.bf16.mxu1 %v3284_v62  ;;  %v3370_v59 = vld [vmem:[#allocation5 + $0x36c] ss:$16 sps:$4 sm:$0xff]   ;;  %v3373_v62 = vld [vmem:[#allocation5 + $0x784] ss:$16 sps:$4 sm:$0xff]  }
  0xbf   :  { %1779 = vmatprep.subr.bf16.mxu0 %v3281_v61  ;;  %v3368_v61 = vld [vmem:[#allocation5 + $0x368] ss:$16 sps:$4 sm:$0xff]  }
  0xc1   :  { %1862 = vmatpush1.bf16.msra.mxu1 %v3282_v0  ;;  %v3371_v0 = vld [vmem:[#allocation5 + $0x780] ss:$16 sps:$4 sm:$0xff]  }
  0xc2   :  { %1780 = vmatpush1.bf16.msra.mxu0 %v3279_v63  ;;  %1863 = vmatprep.subr.bf16.mxu1 %v3290_v2  ;;  %v3376_v63 = vld [vmem:[#allocation5 + $0x38c] ss:$16 sps:$4 sm:$0xff]   ;;  %v3379_v2 = vld [vmem:[#allocation5 + $0x7a4] ss:$16 sps:$4 sm:$0xff]  }
  0xc3   :  { %1781 = vmatprep.subr.bf16.mxu0 %v3287_v1  ;;  %v3374_v1 = vld [vmem:[#allocation5 + $0x388] ss:$16 sps:$4 sm:$0xff]  }
  0xc5   :  { %1864 = vmatpush1.bf16.msra.mxu1 %v3288_v4  ;;  %v3377_v4 = vld [vmem:[#allocation5 + $0x7a0] ss:$16 sps:$4 sm:$0xff]  }
  0xc6   :  { %1782 = vmatpush1.bf16.msra.mxu0 %v3285_v3  ;;  %1865 = vmatprep.subr.bf16.mxu1 %v3296_v8  ;;  %v3382_v3 = vld [vmem:[#allocation5 + $0x3ac] ss:$16 sps:$4 sm:$0xff]   ;;  %v3385_v8 = vld [vmem:[#allocation5 + $0x7c4] ss:$16 sps:$4 sm:$0xff]  }
  0xc7   :  { %1783 = vmatprep.subr.bf16.mxu0 %v3293_v5  ;;  %v3380_v5 = vld [vmem:[#allocation5 + $0x3a8] ss:$16 sps:$4 sm:$0xff]  }
  0xc9   :  { %1866 = vmatpush1.bf16.msra.mxu1 %v3294_v10  ;;  %v3383_v10 = vld [vmem:[#allocation5 + $0x7c0] ss:$16 sps:$4 sm:$0xff]  }
  0xca   :  { %1784 = vmatpush1.bf16.msra.mxu0 %v3291_v9  ;;  %1876 = vmatprep.subr.bf16.mxu1 %v3304_v12  ;;  %v3388_v9 = vld [vmem:[#allocation5 + $0x3cc] ss:$16 sps:$4 sm:$0xff]   ;;  %v3391_v12 = vld [vmem:[#allocation5 + $0x7e4] ss:$16 sps:$4 sm:$0xff]  }
  0xcb   :  { %1794 = vmatprep.subr.bf16.mxu0 %v3301_v11  ;;  %v3386_v11 = vld [vmem:[#allocation5 + $0x3c8] ss:$16 sps:$4 sm:$0xff]  }
  0xcc   :  { %1868 = vmatmul.mubr.bf16.vlgmr.msra.gmra.mrb[4].mxu1 %v3832_v6  ;;  %v3322_v6 = vld [vmem:[#allocation5 + $0x26c] ss:$16 sps:$4 sm:$0xff]  }
  0xcd   :  { %1786 = vmatmul.mubr.bf16.vlgmr.msra.gmra.mrb[0].mxu0 %v3848_v13  ;;  %1877 = vmatpush1.bf16.msra.mxu1 %v3302_v15  ;;  %v3389_v15 = vld [vmem:[#allocation5 + $0x7e0] ss:$16 sps:$4 sm:$0xff]  }
  0xce   :  { %1795 = vmatpush1.bf16.msra.mxu0 %v3299_v14  ;;  %1878 = vmatprep.subr.bf16.mxu1 %v3310_v17  ;;  %v3394_v14 = vld [vmem:[#allocation5 + $0x3ec] ss:$16 sps:$4 sm:$0xff]  }
  0xcf   :  { %1796 = vmatprep.subr.bf16.mxu0 %v3307_v16  ;;  %1826 = vmatprep.mubr.bf16.mxu0 %v3854_v19  ;;  %v3392_v16 = vld [vmem:[#allocation5 + $0x3e8] ss:$16 sps:$4 sm:$0xff]   ;;  %v3399_v17 = vld [vmem:[#allocation5 + $0x40c] ss:$16 sps:$4 sm:$0xff]  }
  0xd0   :  { %1908 = vmatprep.mubr.bf16.mxu1 %v3828_v51  ;;  %v3331_v51 = vld [vmem:[#allocation5 + $0x6a4] ss:$16 sps:$4 sm:$0xff]  }
  0xd1   :  { %1879 = vmatpush1.bf16.msra.mxu1 %v3308_v21  ;;  %v3862_v21 = vcombine.low %v3850_v18, %v3850_v18  ;;  %v3496_v18 = vld [vmem:[#allocation7 + $0x10] ss:$8 sps:$4 sm:$0xff]  }
  0xd2   :  { %1797 = vmatpush1.bf16.msra.mxu0 %v3305_v20  ;;  %1880 = vmatprep.subr.bf16.mxu1 %v3316_v23  ;;  %v3397_v20 = vld [vmem:[#allocation5 + $0x408] ss:$16 sps:$4 sm:$0xff]  }
  0xd3   :  { %1798 = vmatprep.subr.bf16.mxu0 %v3313_v22  ;;  %v3402_v22 = vld [vmem:[#allocation5 + $0x42c] ss:$16 sps:$4 sm:$0xff]   ;;  %v3493_v23 = vld [vmem:[#allocation7] ss:$8 sps:$4 sm:$0xff]  }
  0xd5   :  { %1881 = vmatpush1.bf16.msra.mxu1 %v3314_v25  ;;  %v3400_v25 = vld [vmem:[#allocation5 + $0x428] ss:$16 sps:$4 sm:$0xff]  }
  0xd6   :  { %1799 = vmatpush1.bf16.msra.mxu0 %v3311_v24  ;;  %1882 = vmatprep.subr.bf16.mxu1 %v3322_v6  ;;  %v3495_v24 = vld [vmem:[#allocation7 + $0x4] ss:$8 sps:$4 sm:$0xff]  }
  0xd7   :  { %1800 = vmatprep.subr.bf16.mxu0 %v3319_v26  ;;  %v3498_v26 = vld [vmem:[#allocation7 + $0x14] ss:$8 sps:$4 sm:$0xff]  }
  0xd8   :  { %v3405_v6 = vld [vmem:[#allocation5 + $0x44c] ss:$16 sps:$4 sm:$0xff]  }
  0xd9   :  { %1883 = vmatpush1.bf16.msra.mxu1 %v3320_v28  ;;  %v3403_v28 = vld [vmem:[#allocation5 + $0x448] ss:$16 sps:$4 sm:$0xff]  }
  0xda   :  { %1801 = vmatpush1.bf16.msra.mxu0 %v3317_v27  ;;  %1884 = vmatprep.subr.bf16.mxu1 %v3328_v30  ;;  %v3501_v27 = vld [vmem:[#allocation7 + $0x24] ss:$8 sps:$4 sm:$0xff]   ;;  %v3406_v30 = vld [vmem:[#allocation5 + $0x468] ss:$16 sps:$4 sm:$0xff]  }
  0xdb   :  { %1802 = vmatprep.subr.bf16.mxu0 %v3325_v29  ;;  %v3408_v29 = vld [vmem:[#allocation5 + $0x46c] ss:$16 sps:$4 sm:$0xff]  }
  0xdd   :  { %1885 = vmatpush1.bf16.msra.mxu1 %v3326_v32  ;;  %v3504_v32 = vld [vmem:[#allocation7 + $0x34] ss:$8 sps:$4 sm:$0xff]  }
  0xde   :  { %1803 = vmatpush1.bf16.msra.mxu0 %v3323_v31  ;;  %1886 = vmatprep.subr.bf16.mxu1 %v3334_v33  ;;  %v3411_v31 = vld [vmem:[#allocation5 + $0x48c] ss:$16 sps:$4 sm:$0xff]   ;;  %v3409_v33 = vld [vmem:[#allocation5 + $0x488] ss:$16 sps:$4 sm:$0xff]  }
  0xdf   :  { %1804 = vmatprep.subr.bf16.mxu0 %v3331_v51  ;;  %v3507_v51 = vld [vmem:[#allocation7 + $0x44] ss:$8 sps:$4 sm:$0xff]  }
  0xe1   :  { %1887 = vmatpush1.bf16.msra.mxu1 %v3332_v36  ;;  %v3505_v36 = vld [vmem:[#allocation7 + $0x40] ss:$8 sps:$4 sm:$0xff]  }
  0xe2   :  { %1805 = vmatpush1.bf16.msra.mxu0 %v3329_v35  ;;  %1888 = vmatprep.subr.bf16.mxu1 %v3340_v38  ;;  %v3414_v35 = vld [vmem:[#allocation5 + $0x4ac] ss:$16 sps:$4 sm:$0xff]   ;;  %v3412_v38 = vld [vmem:[#allocation5 + $0x4a8] ss:$16 sps:$4 sm:$0xff]  }
  0xe3   :  { %1806 = vmatprep.subr.bf16.mxu0 %v3337_v37  ;;  %v3510_v37 = vld [vmem:[#allocation7 + $0x54] ss:$8 sps:$4 sm:$0xff]  }
  0xe5   :  { %1889 = vmatpush1.bf16.msra.mxu1 %v3338_v40  ;;  %v3508_v40 = vld [vmem:[#allocation7 + $0x50] ss:$8 sps:$4 sm:$0xff]  }
  0xe6   :  { %1807 = vmatpush1.bf16.msra.mxu0 %v3335_v39  ;;  %1890 = vmatprep.subr.bf16.mxu1 %v3346_v42  ;;  %v3417_v39 = vld [vmem:[#allocation5 + $0x4cc] ss:$16 sps:$4 sm:$0xff]   ;;  %v3415_v42 = vld [vmem:[#allocation5 + $0x4c8] ss:$16 sps:$4 sm:$0xff]  }
  0xe7   :  { %1808 = vmatprep.subr.bf16.mxu0 %v3343_v41  ;;  %v3513_v41 = vld [vmem:[#allocation7 + $0x64] ss:$8 sps:$4 sm:$0xff]  }
  0xe9   :  { %1891 = vmatpush1.bf16.msra.mxu1 %v3344_v44  ;;  %v3511_v44 = vld [vmem:[#allocation7 + $0x60] ss:$8 sps:$4 sm:$0xff]  }
  0xea   :  { %1809 = vmatpush1.bf16.msra.mxu0 %v3341_v43  ;;  %1892 = vmatprep.subr.bf16.mxu1 %v3352_v46  ;;  %v3420_v43 = vld [vmem:[#allocation5 + $0x4ec] ss:$16 sps:$4 sm:$0xff]   ;;  %v3418_v46 = vld [vmem:[#allocation5 + $0x4e8] ss:$16 sps:$4 sm:$0xff]  }
  0xeb   :  { %1810 = vmatprep.subr.bf16.mxu0 %v3349_v45  ;;  %v3516_v45 = vld [vmem:[#allocation7 + $0x74] ss:$8 sps:$4 sm:$0xff]  }
  0xed   :  { %1893 = vmatpush1.bf16.msra.mxu1 %v3350_v48  ;;  %v3514_v48 = vld [vmem:[#allocation7 + $0x70] ss:$8 sps:$4 sm:$0xff]  }
  0xee   :  { %1811 = vmatpush1.bf16.msra.mxu0 %v3347_v47  ;;  %1894 = vmatprep.subr.bf16.mxu1 %v3358_v50  ;;  %v3423_v47 = vld [vmem:[#allocation5 + $0x50c] ss:$16 sps:$4 sm:$0xff]   ;;  %v3421_v50 = vld [vmem:[#allocation5 + $0x508] ss:$16 sps:$4 sm:$0xff]  }
  0xef   :  { %1812 = vmatprep.subr.bf16.mxu0 %v3355_v49  ;;  %v3519_v49 = vld [vmem:[#allocation7 + $0x84] ss:$8 sps:$4 sm:$0xff]  }
  0xf1   :  { %1895 = vmatpush1.bf16.msra.mxu1 %v3356_v53  ;;  %v3517_v53 = vld [vmem:[#allocation7 + $0x80] ss:$8 sps:$4 sm:$0xff]  }
  0xf2   :  { %1813 = vmatpush1.bf16.msra.mxu0 %v3353_v52  ;;  %1896 = vmatprep.subr.bf16.mxu1 %v3364_v55  ;;  %v3426_v52 = vld [vmem:[#allocation5 + $0x52c] ss:$16 sps:$4 sm:$0xff]   ;;  %v3424_v55 = vld [vmem:[#allocation5 + $0x528] ss:$16 sps:$4 sm:$0xff]  }
  0xf3   :  { %1814 = vmatprep.subr.bf16.mxu0 %v3361_v54  ;;  %v3522_v54 = vld [vmem:[#allocation7 + $0x94] ss:$8 sps:$4 sm:$0xff]  }
  0xf5   :  { %1897 = vmatpush1.bf16.msra.mxu1 %v3362_v57  ;;  %v3520_v57 = vld [vmem:[#allocation7 + $0x90] ss:$8 sps:$4 sm:$0xff]  }
  0xf6   :  { %1815 = vmatpush1.bf16.msra.mxu0 %v3359_v56  ;;  %1898 = vmatprep.subr.bf16.mxu1 %v3370_v59  ;;  %v3429_v56 = vld [vmem:[#allocation5 + $0x54c] ss:$16 sps:$4 sm:$0xff]   ;;  %v3427_v59 = vld [vmem:[#allocation5 + $0x548] ss:$16 sps:$4 sm:$0xff]  }
  0xf7   :  { %1816 = vmatprep.subr.bf16.mxu0 %v3367_v58  ;;  %v3525_v58 = vld [vmem:[#allocation7 + $0xa4] ss:$8 sps:$4 sm:$0xff]  }
  0xf9   :  { %1899 = vmatpush1.bf16.msra.mxu1 %v3368_v61  ;;  %v3523_v61 = vld [vmem:[#allocation7 + $0xa0] ss:$8 sps:$4 sm:$0xff]  }
  0xfa   :  { %1817 = vmatpush1.bf16.msra.mxu0 %v3365_v60  ;;  %1900 = vmatprep.subr.bf16.mxu1 %v3376_v63  ;;  %v3432_v60 = vld [vmem:[#allocation5 + $0x56c] ss:$16 sps:$4 sm:$0xff]   ;;  %v3430_v63 = vld [vmem:[#allocation5 + $0x568] ss:$16 sps:$4 sm:$0xff]  }
  0xfb   :  { %1818 = vmatprep.subr.bf16.mxu0 %v3373_v62  ;;  %v3528_v62 = vld [vmem:[#allocation7 + $0xb4] ss:$8 sps:$4 sm:$0xff]  }
  0xfd   :  { %1901 = vmatpush1.bf16.msra.mxu1 %v3374_v1  ;;  %v3526_v1 = vld [vmem:[#allocation7 + $0xb0] ss:$8 sps:$4 sm:$0xff]  }
  0xfe   :  { %1819 = vmatpush1.bf16.msra.mxu0 %v3371_v0  ;;  %1902 = vmatprep.subr.bf16.mxu1 %v3382_v3  ;;  %v3435_v0 = vld [vmem:[#allocation5 + $0x58c] ss:$16 sps:$4 sm:$0xff]   ;;  %v3433_v3 = vld [vmem:[#allocation5 + $0x588] ss:$16 sps:$4 sm:$0xff]  }
  0xff   :  { %1820 = vmatprep.subr.bf16.mxu0 %v3379_v2  ;;  %v3531_v2 = vld [vmem:[#allocation7 + $0xc4] ss:$8 sps:$4 sm:$0xff]  }
 0x101   :  { %1903 = vmatpush1.bf16.msra.mxu1 %v3380_v5  ;;  %v3529_v5 = vld [vmem:[#allocation7 + $0xc0] ss:$8 sps:$4 sm:$0xff]  }
 0x102   :  { %1821 = vmatpush1.bf16.msra.mxu0 %v3377_v4  ;;  %1904 = vmatprep.subr.bf16.mxu1 %v3388_v9  ;;  %v3438_v4 = vld [vmem:[#allocation5 + $0x5ac] ss:$16 sps:$4 sm:$0xff]   ;;  %v3436_v9 = vld [vmem:[#allocation5 + $0x5a8] ss:$16 sps:$4 sm:$0xff]  }
 0x103   :  { %1822 = vmatprep.subr.bf16.mxu0 %v3385_v8  ;;  %v3534_v8 = vld [vmem:[#allocation7 + $0xd4] ss:$8 sps:$4 sm:$0xff]  }
 0x105   :  { %1905 = vmatpush1.bf16.msra.mxu1 %v3386_v11  ;;  %v3532_v11 = vld [vmem:[#allocation7 + $0xd0] ss:$8 sps:$4 sm:$0xff]  }
 0x106   :  { %1823 = vmatpush1.bf16.msra.mxu0 %v3383_v10  ;;  %1906 = vmatprep.subr.bf16.mxu1 %v3394_v14  ;;  %v3441_v10 = vld [vmem:[#allocation5 + $0x5cc] ss:$16 sps:$4 sm:$0xff]  }
 0x107   :  { %1824 = vmatprep.subr.bf16.mxu0 %v3391_v12  ;;  %v3439_v12 = vld [vmem:[#allocation5 + $0x5c8] ss:$16 sps:$4 sm:$0xff]   ;;  %v3444_v14 = vld [vmem:[#allocation5 + $0x5ec] ss:$16 sps:$4 sm:$0xff]  }
 0x109   :  { %1907 = vmatpush1.bf16.msra.mxu1 %v3392_v16  ;;  %v3447_v16 = vld [vmem:[#allocation5 + $0x60c] ss:$16 sps:$4 sm:$0xff]  }
 0x10a   :  { %1825 = vmatpush1.bf16.msra.mxu0 %v3389_v15  ;;  %1917 = vmatprep.subr.bf16.mxu1 %v3399_v17  ;;  %v3442_v15 = vld [vmem:[#allocation5 + $0x5e8] ss:$16 sps:$4 sm:$0xff]  }
 0x10b   :  { %2403 = vmatprep.subr.bf16.mxu0 %v3495_v24  ;;  %v3445_v17 = vld [vmem:[#allocation5 + $0x608] ss:$16 sps:$4 sm:$0xff]  }
 0x10c   :  { %1909 = vmatmul.mubr.bf16.vlgmr.msra.gmra.mrb[4].mxu1 %v3834_v7  ;;  %v3499_v7 = vld [vmem:[#allocation7 + $0x20] ss:$8 sps:$4 sm:$0xff]  }
 0x10d   :  { %1827 = vmatmul.mubr.bf16.vlgmr.msra.gmra.mrb[0].mxu0 %v3862_v21  ;;  %1918 = vmatpush1.bf16.msra.mxu1 %v3397_v20  ;;  %v3450_v20 = vld [vmem:[#allocation5 + $0x62c] ss:$16 sps:$4 sm:$0xff]   ;;  %v3451_v24 = vld [vmem:[#allocation5 + $0x648] ss:$16 sps:$4 sm:$0xff]  }
 0x10e   :  { %1949 = vmatprep.mubr.bf16.mxu1 %v3843_v34  ;;  %1919 = vmatprep.subr.bf16.mxu1 %v3402_v22  ;;  %v3502_v34 = vld [vmem:[#allocation7 + $0x30] ss:$8 sps:$4 sm:$0xff]  }
 0x10f   :  { %2404 = vmatpush1.bf16.msra.mxu0 %v3493_v23  ;;  %v3448_v22 = vld [vmem:[#allocation5 + $0x628] ss:$16 sps:$4 sm:$0xff]   ;;  %v3453_v23 = vld [vmem:[#allocation5 + $0x64c] ss:$16 sps:$4 sm:$0xff]  }
 0x110   :  { %2405 = vmatprep.subr.bf16.mxu0 %v3498_v26  ;;  %v3454_v26 = vld [vmem:[#allocation5 + $0x668] ss:$16 sps:$4 sm:$0xff]  }
 0x111   :  { %1920 = vmatpush1.bf16.msra.mxu1 %v3400_v25  ;;  %v3456_v25 = vld [vmem:[#allocation5 + $0x66c] ss:$16 sps:$4 sm:$0xff]  }
 0x112   :  { %1921 = vmatprep.subr.bf16.mxu1 %v3405_v6  ;;  %v3459_v6 = vld [vmem:[#allocation5 + $0x68c] ss:$16 sps:$4 sm:$0xff]  }
 0x113   :  { %2406 = vmatpush1.bf16.msra.mxu0 %v3496_v18  ;;  %v3457_v18 = vld [vmem:[#allocation5 + $0x688] ss:$16 sps:$4 sm:$0xff]  }
 0x114   :  { %2407 = vmatprep.subr.bf16.mxu0 %v3501_v27  ;;  %v3462_v27 = vld [vmem:[#allocation5 + $0x6ac] ss:$16 sps:$4 sm:$0xff]  }
 0x115   :  { %1922 = vmatpush1.bf16.msra.mxu1 %v3403_v28  ;;  %v3465_v28 = vld [vmem:[#allocation5 + $0x6cc] ss:$16 sps:$4 sm:$0xff]  }
 0x116   :  { %1923 = vmatprep.subr.bf16.mxu1 %v3408_v29  ;;  %v3537_v29 = vld [vmem:[#allocation7 + $0xe4] ss:$8 sps:$4 sm:$0xff]  }
 0x117   :  { %2408 = vmatpush1.bf16.msra.mxu0 %v3499_v7  ;;  %v3535_v7 = vld [vmem:[#allocation7 + $0xe0] ss:$8 sps:$4 sm:$0xff]  }
 0x118   :  { %2409 = vmatprep.subr.bf16.mxu0 %v3504_v32  ;;  %v3463_v32 = vld [vmem:[#allocation5 + $0x6c8] ss:$16 sps:$4 sm:$0xff]  }
 0x119   :  { %1924 = vmatpush1.bf16.msra.mxu1 %v3406_v30 }
 0x11a   :  { %1925 = vmatprep.subr.bf16.mxu1 %v3411_v31 }
 0x11b   :  { %2410 = vmatpush1.bf16.msra.mxu0 %v3502_v34 }
 0x11c   :  { %2411 = vmatprep.subr.bf16.mxu0 %v3507_v51  ;;  %v3468_v51 = vld [vmem:[#allocation5 + $0x6ec] ss:$16 sps:$4 sm:$0xff]  }
 0x11d   :  { %1926 = vmatpush1.bf16.msra.mxu1 %v3409_v33  ;;  %v3540_v33 = vld [vmem:[#allocation7 + $0xf4] ss:$8 sps:$4 sm:$0xff]  }
 0x11e   :  { %1927 = vmatprep.subr.bf16.mxu1 %v3414_v35  ;;  %v3538_v35 = vld [vmem:[#allocation7 + $0xf0] ss:$8 sps:$4 sm:$0xff]  }
 0x11f   :  { %2412 = vmatpush1.bf16.msra.mxu0 %v3505_v36  ;;  %v3466_v36 = vld [vmem:[#allocation5 + $0x6e8] ss:$16 sps:$4 sm:$0xff]  }
 0x120   :  { %2413 = vmatprep.subr.bf16.mxu0 %v3510_v37  ;;  %v3471_v37 = vld [vmem:[#allocation5 + $0x70c] ss:$16 sps:$4 sm:$0xff]  }
 0x121   :  { %1928 = vmatpush1.bf16.msra.mxu1 %v3412_v38  ;;  %v3543_v38 = vld [vmem:[#allocation7 + $0x104] ss:$8 sps:$4 sm:$0xff]  }
 0x122   :  { %1929 = vmatprep.subr.bf16.mxu1 %v3417_v39  ;;  %v3469_v39 = vld [vmem:[#allocation5 + $0x708] ss:$16 sps:$4 sm:$0xff]  }
 0x123   :  { %2414 = vmatpush1.bf16.msra.mxu0 %v3508_v40  ;;  %v3474_v40 = vld [vmem:[#allocation5 + $0x72c] ss:$16 sps:$4 sm:$0xff]  }
 0x124   :  { %2415 = vmatprep.subr.bf16.mxu0 %v3513_v41  ;;  %v3472_v41 = vld [vmem:[#allocation5 + $0x728] ss:$16 sps:$4 sm:$0xff]  }
 0x125   :  { %1930 = vmatpush1.bf16.msra.mxu1 %v3415_v42  ;;  %v3477_v42 = vld [vmem:[#allocation5 + $0x74c] ss:$16 sps:$4 sm:$0xff]  }
 0x126   :  { %1931 = vmatprep.subr.bf16.mxu1 %v3420_v43  ;;  %v3475_v43 = vld [vmem:[#allocation5 + $0x748] ss:$16 sps:$4 sm:$0xff]  }
 0x127   :  { %2416 = vmatpush1.bf16.msra.mxu0 %v3511_v44  ;;  %v3480_v44 = vld [vmem:[#allocation5 + $0x76c] ss:$16 sps:$4 sm:$0xff]  }
 0x128   :  { %2417 = vmatprep.subr.bf16.mxu0 %v3516_v45  ;;  %v3478_v45 = vld [vmem:[#allocation5 + $0x768] ss:$16 sps:$4 sm:$0xff]  }
 0x129   :  { %1932 = vmatpush1.bf16.msra.mxu1 %v3418_v46  ;;  %v3483_v46 = vld [vmem:[#allocation5 + $0x78c] ss:$16 sps:$4 sm:$0xff]  }
 0x12a   :  { %1933 = vmatprep.subr.bf16.mxu1 %v3423_v47  ;;  %v3481_v47 = vld [vmem:[#allocation5 + $0x788] ss:$16 sps:$4 sm:$0xff]  }
 0x12b   :  { %2418 = vmatpush1.bf16.msra.mxu0 %v3514_v48  ;;  %v3486_v48 = vld [vmem:[#allocation5 + $0x7ac] ss:$16 sps:$4 sm:$0xff]  }
 0x12c   :  { %2419 = vmatprep.subr.bf16.mxu0 %v3519_v49  ;;  %v3484_v49 = vld [vmem:[#allocation5 + $0x7a8] ss:$16 sps:$4 sm:$0xff]  }
 0x12d   :  { %1934 = vmatpush1.bf16.msra.mxu1 %v3421_v50  ;;  %v3489_v50 = vld [vmem:[#allocation5 + $0x7cc] ss:$16 sps:$4 sm:$0xff]  }
 0x12e   :  { %1935 = vmatprep.subr.bf16.mxu1 %v3426_v52  ;;  %v3487_v52 = vld [vmem:[#allocation5 + $0x7c8] ss:$16 sps:$4 sm:$0xff]  }
 0x12f   :  { %2420 = vmatpush1.bf16.msra.mxu0 %v3517_v53  ;;  %v3492_v53 = vld [vmem:[#allocation5 + $0x7ec] ss:$16 sps:$4 sm:$0xff]  }
 0x130   :  { %2421 = vmatprep.subr.bf16.mxu0 %v3522_v54  ;;  %v3490_v54 = vld [vmem:[#allocation5 + $0x7e8] ss:$16 sps:$4 sm:$0xff]  }
 0x131   :  { %1936 = vmatpush1.bf16.msra.mxu1 %v3424_v55  ;;  %v343_v55 = vlaneseq }
 0x132   :  { %1937 = vmatprep.subr.bf16.mxu1 %v3429_v56 }
 0x133   :  { %2422 = vmatpush1.bf16.msra.mxu0 %v3520_v57  ;;  %v3870_v56 = vshrl.u32 %v343_v55, 7 }
 0x134   :  { %2423 = vmatprep.subr.bf16.mxu0 %v3525_v58  ;;  %v3876_v58 = vld [vmem:[%s3913_s2] sm:$0xf] }
 0x135   :  { %1938 = vmatpush1.bf16.msra.mxu1 %v3427_v59  ;;  %v345_v57 = vsub.s32 0, %v3870_v56  ;;  %v349_v59 = vsub.s32 1, %v3870_v56 }
 0x136   :  { %1939 = vmatprep.subr.bf16.mxu1 %v3432_v60 }
 0x137   :  { %2424 = vmatpush1.bf16.msra.mxu0 %v3523_v61  ;;  %v346_v60 = vrot.slane %v3876_v58, %v345_v57 }
 0x138   :  { %2425 = vmatprep.subr.bf16.mxu0 %v3528_v62 }
 0x139   :  { %1940 = vmatpush1.bf16.msra.mxu1 %v3430_v63 }
 0x13a   :  { %1941 = vmatprep.subr.bf16.mxu1 %v3435_v0 }
 0x13b   :  { %2426 = vmatpush1.bf16.msra.mxu0 %v3526_v1 }
 0x13c   :  { %2427 = vmatprep.subr.bf16.mxu0 %v3531_v2 }
 0x13d   :  { %1942 = vmatpush1.bf16.msra.mxu1 %v3433_v3 }
 0x13e   :  { %1943 = vmatprep.subr.bf16.mxu1 %v3438_v4 }
 0x13f   :  { %2428 = vmatpush1.bf16.msra.mxu0 %v3529_v5 }
 0x140   :  { %2429 = vmatprep.subr.bf16.mxu0 %v3534_v8 }
 0x141   :  { %1944 = vmatpush1.bf16.msra.mxu1 %v3436_v9 }
 0x142   :  { %1945 = vmatprep.subr.bf16.mxu1 %v3441_v10  ;;  %v3541_v10 = vld [vmem:[#allocation7 + $0x100] ss:$8 sps:$4 sm:$0xff]  }
 0x143   :  { %2430 = vmatpush1.bf16.msra.mxu0 %v3532_v11 }
 0x144   :  { %2431 = vmatprep.subr.bf16.mxu0 %v3537_v29  ;;  %v3553_v29 = vld [vmem:[#allocation7 + $0x140] ss:$8 sps:$4 sm:$0xff]  }
 0x145   :  { %1946 = vmatpush1.bf16.msra.mxu1 %v3439_v12  ;;  %v3546_v12 = vld [vmem:[#allocation7 + $0x114] ss:$8 sps:$4 sm:$0xff]  }
 0x146   :  { %1947 = vmatprep.subr.bf16.mxu1 %v3444_v14  ;;  %v3589_v14 = vld [vmem:[#allocation8 + $0x40] sm:$0xff]  }
 0x147   :  { %2432 = vmatpush1.bf16.msra.mxu0 %v3535_v7  ;;  %v3598_v7 = vld [vmem:[#allocation8 + $0x20] sm:$0xff]  }
 0x148   :  { %2433 = vmatprep.subr.bf16.mxu0 %v3540_v33  ;;  %v3564_v33 = vld [vmem:[#allocation7 + $0x174] ss:$8 sps:$4 sm:$0xff]  }
 0x149   :  { %1948 = vmatpush1.bf16.msra.mxu1 %v3442_v15  ;;  %v3590_v15 = vld [vmem:[#allocation8] sm:$0xff]  }
 0x14a   :  { %1958 = vmatprep.subr.bf16.mxu1 %v3447_v16  ;;  %v3591_v16 = vld [vmem:[#allocation8 + $0x48] sm:$0xff]  }
 0x14b   :  { %2434 = vmatpush1.bf16.msra.mxu0 %v3538_v35  ;;  %v3562_v35 = vld [vmem:[#allocation7 + $0x170] ss:$8 sps:$4 sm:$0xff]  }
 0x14c   :  { %1950 = vmatmul.mubr.bf16.vlgmr.msra.gmra.mrb[4].mxu1 %v3848_v13  ;;  %v3460_v13 = vld [vmem:[#allocation5 + $0x6a8] ss:$16 sps:$4 sm:$0xff]   ;;  %2444 = vmatprep.subr.bf16.mxu0 %v3543_v38  ;;  %v3570_v38 = vld [vmem:[#allocation7 + $0x194] ss:$8 sps:$4 sm:$0xff]  }
 0x14d   :  { %1959 = vmatpush1.bf16.msra.mxu1 %v3445_v17  ;;  %1990 = vmatprep.mubr.bf16.mxu1 %v3854_v19  ;;  %v3544_v17 = vld [vmem:[#allocation7 + $0x110] ss:$8 sps:$4 sm:$0xff]  }
 0x14e   :  { %1960 = vmatprep.subr.bf16.mxu1 %v3450_v20  ;;  %v3549_v20 = vld [vmem:[#allocation7 + $0x124] ss:$8 sps:$4 sm:$0xff]  }
 0x151   :  { %1961 = vmatpush1.bf16.msra.mxu1 %v3448_v22  ;;  %v3592_v22 = vld [vmem:[#allocation8 + $0x8] sm:$0xff]  }
 0x152   :  { %1962 = vmatprep.subr.bf16.mxu1 %v3453_v23  ;;  %v3593_v23 = vld [vmem:[#allocation8 + $0x50] sm:$0xff]  }
 0x155   :  { %1963 = vmatpush1.bf16.msra.mxu1 %v3451_v24  ;;  %v3547_v24 = vld [vmem:[#allocation7 + $0x120] ss:$8 sps:$4 sm:$0xff]  }
 0x156   :  { %1964 = vmatprep.subr.bf16.mxu1 %v3456_v25  ;;  %v3552_v25 = vld [vmem:[#allocation7 + $0x134] ss:$8 sps:$4 sm:$0xff]  }
 0x159   :  { %1965 = vmatpush1.bf16.msra.mxu1 %v3454_v26  ;;  %v3594_v26 = vld [vmem:[#allocation8 + $0x10] sm:$0xff]  }
 0x15a   :  { %1966 = vmatprep.subr.bf16.mxu1 %v3459_v6  ;;  %v3595_v6 = vld [vmem:[#allocation8 + $0x58] sm:$0xff]  }
 0x15d   :  { %1967 = vmatpush1.bf16.msra.mxu1 %v3457_v18  ;;  %v3550_v18 = vld [vmem:[#allocation7 + $0x130] ss:$8 sps:$4 sm:$0xff]  }
 0x15e   :  { %1968 = vmatprep.subr.bf16.mxu1 %v3462_v27  ;;  %v3555_v27 = vld [vmem:[#allocation7 + $0x144] ss:$8 sps:$4 sm:$0xff]  }
 0x15f   :  { %v1705_v19 = vpop.f32.mrb[0].mxu1 }
 0x160   :  { %v1707_v30 = vpop.f32.mrb[1].mxu1  ;;  %v1706_v61 = vadd.f32 %v1705_v19, %v346_v60  ;;  %v3558_v19 = vld [vmem:[#allocation7 + $0x154] ss:$8 sps:$4 sm:$0xff]  }
 0x161   :  { %v1709_v31 = vpop.f32.mrb[2].mxu1  ;;  %1969 = vmatpush1.bf16.msra.mxu1 %v3460_v13  ;;  %v3596_v13 = vld [vmem:[#allocation8 + $0x18] sm:$0xff]  }
 0x162   :  { %v1710_v34 = vpop.f32.mrb[3].mxu1  ;;  %1970 = vmatprep.subr.bf16.mxu1 %v3465_v28  ;;  %v3597_v28 = vld [vmem:[#allocation8 + $0x60] sm:$0xff]   ;;  %v3556_v31 = vld [vmem:[#allocation7 + $0x150] ss:$8 sps:$4 sm:$0xff]  }
 0x163   :  { %v3600_v34 = vld [vmem:[#allocation8 + $0x28] sm:$0xff]  }
 0x165   :  { %1971 = vmatpush1.bf16.msra.mxu1 %v3463_v32  ;;  %v3561_v32 = vld [vmem:[#allocation7 + $0x164] ss:$8 sps:$4 sm:$0xff]  }
 0x166   :  { %1972 = vmatprep.subr.bf16.mxu1 %v3468_v51  ;;  %v3559_v51 = vld [vmem:[#allocation7 + $0x160] ss:$8 sps:$4 sm:$0xff]  }
 0x169   :  { %1973 = vmatpush1.bf16.msra.mxu1 %v3466_v36  ;;  %v3567_v36 = vld [vmem:[#allocation7 + $0x184] ss:$8 sps:$4 sm:$0xff]  }
 0x16a   :  { %1974 = vmatprep.subr.bf16.mxu1 %v3471_v37  ;;  %v3565_v37 = vld [vmem:[#allocation7 + $0x180] ss:$8 sps:$4 sm:$0xff]  }
 0x16d   :  { %1975 = vmatpush1.bf16.msra.mxu1 %v3469_v39  ;;  %v3568_v39 = vld [vmem:[#allocation7 + $0x190] ss:$8 sps:$4 sm:$0xff]  }
 0x16e   :  { %1976 = vmatprep.subr.bf16.mxu1 %v3474_v40  ;;  %v3573_v40 = vld [vmem:[#allocation7 + $0x1a4] ss:$8 sps:$4 sm:$0xff]  }
 0x171   :  { %1977 = vmatpush1.bf16.msra.mxu1 %v3472_v41  ;;  %v3571_v41 = vld [vmem:[#allocation7 + $0x1a0] ss:$8 sps:$4 sm:$0xff]  }
 0x172   :  { %1978 = vmatprep.subr.bf16.mxu1 %v3477_v42  ;;  %v3576_v42 = vld [vmem:[#allocation7 + $0x1b4] ss:$8 sps:$4 sm:$0xff]  }
 0x175   :  { %1979 = vmatpush1.bf16.msra.mxu1 %v3475_v43  ;;  %v3574_v43 = vld [vmem:[#allocation7 + $0x1b0] ss:$8 sps:$4 sm:$0xff]  }
 0x176   :  { %1980 = vmatprep.subr.bf16.mxu1 %v3480_v44  ;;  %v3579_v44 = vld [vmem:[#allocation7 + $0x1c4] ss:$8 sps:$4 sm:$0xff]  }
 0x179   :  { %1981 = vmatpush1.bf16.msra.mxu1 %v3478_v45  ;;  %v3577_v45 = vld [vmem:[#allocation7 + $0x1c0] ss:$8 sps:$4 sm:$0xff]  }
 0x17a   :  { %1982 = vmatprep.subr.bf16.mxu1 %v3483_v46  ;;  %v3582_v46 = vld [vmem:[#allocation7 + $0x1d4] ss:$8 sps:$4 sm:$0xff]  }
 0x17d   :  { %1983 = vmatpush1.bf16.msra.mxu1 %v3481_v47  ;;  %v3580_v47 = vld [vmem:[#allocation7 + $0x1d0] ss:$8 sps:$4 sm:$0xff]  }
 0x17e   :  { %1984 = vmatprep.subr.bf16.mxu1 %v3486_v48  ;;  %v3585_v48 = vld [vmem:[#allocation7 + $0x1e4] ss:$8 sps:$4 sm:$0xff]  }
 0x181   :  { %1985 = vmatpush1.bf16.msra.mxu1 %v3484_v49  ;;  %v3583_v49 = vld [vmem:[#allocation7 + $0x1e0] ss:$8 sps:$4 sm:$0xff]  }
 0x182   :  { %1986 = vmatprep.subr.bf16.mxu1 %v3489_v50  ;;  %v3588_v50 = vld [vmem:[#allocation7 + $0x1f4] ss:$8 sps:$4 sm:$0xff]  }
 0x185   :  { %1987 = vmatpush1.bf16.msra.mxu1 %v3487_v52  ;;  %v3586_v52 = vld [vmem:[#allocation7 + $0x1f0] ss:$8 sps:$4 sm:$0xff]  }
 0x186   :  { %1988 = vmatprep.subr.bf16.mxu1 %v3492_v53  ;;  %v353_v53 = vsub.s32 2, %v3870_v56 }
 0x188   :  { %v354_v55 = vrot.slane %v3876_v58, %v353_v53 }
 0x189   :  { %1989 = vmatpush1.bf16.msra.mxu1 %v3490_v54  ;;  %v357_v54 = vsub.s32 3, %v3870_v56 }
 0x18a   :  { %3036 = vmatprep.subr.bf16.mxu1 %v3589_v14 }
 0x18b   :  { %v358_v60 = vrot.slane %v3876_v58, %v357_v54 }
 0x18c   :  { %1991 = vmatmul.mubr.bf16.vlgmr.msra.gmra.mrb[4].mxu1 %v3862_v21  ;;  %v350_v21 = vrot.slane %v3876_v58, %v349_v59  ;;  %v2071_v58 = vld [vmem:[%s3915_s4] sm:$0x3] }
 0x18d   :  { %3037 = vmatpush3.bf16.msra.mxu1 %v3590_v15  ;;  %v2080_v14 = vrot.slane %v2071_v58, %v349_v59 }
 0x18e   :  { %v1708_v62 = vadd.f32 %v1707_v30, %v350_v21  ;;  %3038 = vmatprep.subr.bf16.mxu1 %v3591_v16  ;;  %v3599_v30 = vld [vmem:[#allocation8 + $0x68] sm:$0xff]  }
 0x191   :  { %3039 = vmatpush3.bf16.msra.mxu1 %v3592_v22 }
 0x192   :  { %3040 = vmatprep.subr.bf16.mxu1 %v3593_v23 }
 0x195   :  { %3041 = vmatpush3.bf16.msra.mxu1 %v3594_v26 }
 0x196   :  { %3042 = vmatprep.subr.bf16.mxu1 %v3595_v6 }
 0x199   :  { %3043 = vmatpush3.bf16.msra.mxu1 %v3596_v13 }
 0x19a   :  { %3044 = vmatprep.subr.bf16.mxu1 %v3597_v28 }
 0x19d   :  { %3045 = vmatpush3.bf16.msra.mxu1 %v3598_v7 }
 0x19e   :  { %3046 = vmatprep.subr.bf16.mxu1 %v3599_v30 }
 0x1a1   :  { %3047 = vmatpush3.bf16.msra.mxu1 %v3600_v34 }
 0x1e0   :  { %v1828_v63 = vpop.f32.mrb[0].mxu0 }
 0x1e1   :  { %v3059_v0 = vadd.f32 %v1828_v63, %v1706_v61  ;;  %v1830_v1 = vpop.f32.mrb[1].mxu0 }
 0x1e2   :  { %v3061_v2 = vadd.f32 %v1830_v1, %v1708_v62  ;;  %v1832_v3 = vpop.f32.mrb[2].mxu0 }
 0x1e3   :  { %v1999_v4 = vmax.f32 %v3059_v0, 0.0  ;;  %v1833_v5 = vpop.f32.mrb[3].mxu0 }
 0x1e4   :  { %v2000_v8 = vmax.f32 %v3061_v2, 0.0 }
 0x1e5   :  { %v2003_v11 = vpack.c.bf16 %v1999_v4, %v1999_v4 }
 0x1e6   :  { %v2004_v9 = vpack.c.bf16 %v2000_v8, %v2000_v8  ;;  %v3601_v8 = vld [vmem:[#allocation8 + $0x70] sm:$0xff]  }
 0x1e7   :  { %3048 = vmatprep.subr.bf16.mxu1 %v3601_v8 }
 0x1e8   :  { %2435 = vmatprep.mubr.bf16.mxu0 %v2004_v9  ;;  %v3602_v9 = vld [vmem:[#allocation8 + $0x30] sm:$0xff]  }
 0x1e9   :  { %2436 = vmatmul.mubr.bf16.vlgmr.msra.gmra.mrb[4].mxu0 %v2003_v11  ;;  %3049 = vmatpush3.bf16.msra.mxu1 %v3602_v9  ;;  %v3604_v11 = vld [vmem:[#allocation8 + $0x38] sm:$0xff]  }
 0x1ea   :  { %2445 = vmatpush1.bf16.msra.mxu0 %v3541_v10  ;;  %v3603_v10 = vld [vmem:[#allocation8 + $0x78] sm:$0xff]  }
 0x1eb   :  { %2446 = vmatprep.subr.bf16.mxu0 %v3546_v12  ;;  %3050 = vmatprep.subr.bf16.mxu1 %v3603_v10  ;;  %v2076_v12 = vrot.slane %v2071_v58, %v345_v57  ;;  %v3019_v57 = vld [vmem:[%s3917_s6] ss:$0 sm:$0xff]  ;;  %s3697_s6 = scalar_lea.vmem %s2681_s9, 128 }
 0x1ec   :  { %p3698_p4 = scmp.ne.s32.totalorder %s2681_s9, %s3697_s6  ;;  %p3703_p6 = scmp.lt.s32.totalorder %s3697_s6, %s3697_s6 }
 0x1ed   :  { %3051 = vmatpush3.bf16.msra.mxu1 %v3604_v11 }
 0x1ee   :  { %2447 = vmatpush1.bf16.msra.mxu0 %v3544_v17  ;;  %p3704_p7 = por %p3703_p6, %p3702_p5 }
 0x1ef   :  { %2448 = vmatprep.subr.bf16.mxu0 %v3549_v20 }
 0x1f0   :  { %p3705_p8 = pnand %p3704_p7, %p3698_p4 }
 0x1f2   :  { %2449 = vmatpush1.bf16.msra.mxu0 %v3547_v24 }
 0x1f3   :  { %2450 = vmatprep.subr.bf16.mxu0 %v3552_v25 }
 0x1f6   :  { %2451 = vmatpush1.bf16.msra.mxu0 %v3550_v18 }
 0x1f7   :  { %2452 = vmatprep.subr.bf16.mxu0 %v3555_v27 }
 0x1fa   :  { %2453 = vmatpush1.bf16.msra.mxu0 %v3553_v29 }
 0x1fb   :  { %2454 = vmatprep.subr.bf16.mxu0 %v3558_v19 }
 0x1fe   :  { %2455 = vmatpush1.bf16.msra.mxu0 %v3556_v31 }
 0x1ff   :  { %2456 = vmatprep.subr.bf16.mxu0 %v3561_v32 }
 0x202   :  { %2457 = vmatpush1.bf16.msra.mxu0 %v3559_v51 }
 0x203   :  { %2458 = vmatprep.subr.bf16.mxu0 %v3564_v33 }
 0x206   :  { %2459 = vmatpush1.bf16.msra.mxu0 %v3562_v35 }
 0x207   :  { %2460 = vmatprep.subr.bf16.mxu0 %v3567_v36 }
 0x20a   :  { %2461 = vmatpush1.bf16.msra.mxu0 %v3565_v37 }
 0x20b   :  { %2462 = vmatprep.subr.bf16.mxu0 %v3570_v38 }
 0x20e   :  { %2463 = vmatpush1.bf16.msra.mxu0 %v3568_v39 }
 0x20f   :  { %2464 = vmatprep.subr.bf16.mxu0 %v3573_v40 }
 0x212   :  { %2465 = vmatpush1.bf16.msra.mxu0 %v3571_v41 }
 0x213   :  { %2466 = vmatprep.subr.bf16.mxu0 %v3576_v42 }
 0x216   :  { %2467 = vmatpush1.bf16.msra.mxu0 %v3574_v43 }
 0x217   :  { %2468 = vmatprep.subr.bf16.mxu0 %v3579_v44 }
 0x21a   :  { %2469 = vmatpush1.bf16.msra.mxu0 %v3577_v45 }
 0x21b   :  { %2470 = vmatprep.subr.bf16.mxu0 %v3582_v46 }
 0x21e   :  { %2471 = vmatpush1.bf16.msra.mxu0 %v3580_v47 }
 0x21f   :  { %2472 = vmatprep.subr.bf16.mxu0 %v3585_v48 }
 0x222   :  { %2473 = vmatpush1.bf16.msra.mxu0 %v3583_v49 }
 0x223   :  { %2474 = vmatprep.subr.bf16.mxu0 %v3588_v50 }
 0x226   :  { %2475 = vmatpush1.bf16.msra.mxu0 %v3586_v52 }
 0x25f   :  { %v1992_v21 = vpop.f32.mrb[4].mxu1 }
 0x260   :  { %v3062_v61 = vadd.f32 %v1992_v21, %v354_v55  ;;  %v1994_v62 = vpop.f32.mrb[5].mxu1 }
 0x261   :  { %v3063_v63 = vadd.f32 %v1994_v62, %v358_v60  ;;  %v1996_v0 = vpop.f32.mrb[6].mxu1 }
 0x262   :  { %v2001_v1 = vmax.f32 %v3062_v61, 0.0  ;;  %v1997_v2 = vpop.f32.mrb[7].mxu1 }
 0x263   :  { %v2002_v3 = vmax.f32 %v3063_v63, 0.0 }
 0x264   :  { %v2005_v5 = vpack.c.bf16 %v2001_v1, %v2001_v1 }
 0x265   :  { %v2006_v4 = vpack.c.bf16 %v2002_v3, %v2002_v3 }
 0x267   :  { %2476 = vmatprep.mubr.bf16.mxu0 %v2006_v4 }
 0x268   :  { %2477 = vmatmul.mubr.bf16.vlgmr.msra.gmra.mrb[4].mxu0 %v2005_v5 }
 0x33b   :  { %v2478_v15 = vpop.f32.mrb[4].mxu0 }
 0x33c   :  { %v3064_v16 = vadd.f32 %v2478_v15, %v2076_v12  ;;  %v2480_v17 = vpop.f32.mrb[5].mxu0 }
 0x33d   :  { %v3065_v20 = vadd.f32 %v2480_v17, %v2080_v14  ;;  %v2482_v22 = vpop.f32.mrb[6].mxu0 }
 0x33e   :  { %v2485_v23 = vmax.f32 %v3064_v16, 0.0  ;;  %v2483_v24 = vpop.f32.mrb[7].mxu0 }
 0x33f   :  { %v2486_v25 = vmax.f32 %v3065_v20, 0.0 }
 0x340   :  { %v2487_v6 = vpack.c.bf16 %v2485_v23, %v2485_v23 }
 0x341   :  { %v2488_v26 = vpack.c.bf16 %v2486_v25, %v2486_v25 }
 0x343   :  { %2656 = vmatprep.mubr.bf16.mxu1 %v2488_v26 }
 0x344   :  { %2657 = vmatmul.mubr.bf16.vlgmr.msra.gmra.mrb[8].mxu1 %v2487_v6 }
 0x417   :  { %v3052_v18 = vpop.f32.mrb[8].mxu1 }
 0x418   :  { %v3053_v27 = vpop.f32.mrb[9].mxu1 }
 0x419   :  { %v3054_v56 = vadd.f32 %v3053_v27, %v3052_v18  ;;  %v3055_v59 = vpop.f32.mrb[10].mxu1 }
 0x41a   :  { %v3056_v13 = vpop.f32.mrb[11].mxu1 }
 0x41b   :  { %v2659_v28 = vadd.f32 %v3054_v56, %v3019_v57 }
 0x41d   :  { %2664 = vmax.xlane.f32.xlu0 %v2659_v28 }
 0x4aa   :  { %v2665_v29 = vpop.xlane.xlu0 %2664 }
 0x4ab   :  { %v2666_v19 = vsub.f32 %v2659_v28, %v2665_v29 }
 0x4ad   :  { %v2667_v7 = vmul.f32 1.442695, %v2666_v19 }
 0x4af   :  { %3605 = vpow2.f32 %v2667_v7 }
 0x4b9   :  { %v3606_v30 = vpop.eup %3605 }
 0x4ba   :  { %2669 = vadd.xlane.f32.xlu0 %v3606_v30 }
 0x547   :  { %v2670_v31 = vpop.xlane.xlu0 %2669 }
 0x548   :  { %3607 = vrcp.f32 %v2670_v31 }
 0x552   :  { %v3608_v32 = vpop.eup %3607 }
 0x553   :  { %v2672_v34 = vmul.f32 %v3608_v32, %v3606_v30 }
 0x555   :  { %2673 = vst [vmem:[#allocation10] sm:$0xff] %v2672_v34 }
 0x556   :  { %3708 = shalt.err (!%p3705_p8)
}
 0x557   :  { %s3709_s12 = scalar_lea.hbm %s3918_s7, 128 }
 0x558   :  { %p3710_p9 = scmp.ne.s32.totalorder %s3918_s7, %s3709_s12  ;;  %p3713_p10 = scmp.lt.u32.totalorder %s3709_s12, %s3918_s7 }
 0x55a   :  { %p3715_p11 = pnand %p3713_p10, %p3710_p9 }
 0x55c   :  { %3718 = shalt.err (!%p3715_p11)
}
 0x55d   :  { %2683 = dma.vmem_to_hbm [thread:$0]  %s2681_s9, 128, %s3918_s7, [#allocation4]  }
 0x55e   :  { %3725 = dma.done.wait [#allocation4], 128  }
 0x55f   :  { %3726 = vsyncadd [#allocation4], 4294967168 }
 0x560   :  { %2687 = vsyncpa [#allocation3], 1 }
 0x561   :  { %2688 = vsyncpa [#allocation6], 1 }
 0x562   :  { %2689 = vsyncpa [#allocation9], 1 }
 0x563   :  { %2690 = vsyncpa [#allocation4], 1 }

</bundles_post_ra>
